<compile_context>
chip_gen: v6e
topology: v6e:2x2x1
jax: 0.10.0
libtpu: 0.0.40
codegen_flags: <defaults>
</compile_context>

<pallas_src>
import functools

import jax
import jax.numpy as jnp
import numpy as np
from jax.experimental import pallas as pl
from jax.experimental.pallas import tpu as pltpu

K = 13            # conv kernel size
PAD = K // 2      # same padding = 6
C_OUT = 64
N_CLASSES = 10
OUT_LANES = 128   # lane-dense padded logits width
VMEM_LIMIT = 48 * 1024 * 1024


def _round_up(x, m):
    return (x + m - 1) // m * m


# --------------------------------------------------------------------------
# Kernels
# --------------------------------------------------------------------------
def _xgroup_tree_max(mh, c_out):
    """Lane-aligned tree reduce of (B, groups*c_out) -> (B, c_out) max over groups."""
    groups = mh.shape[-1] // c_out
    cur = mh
    carry = None
    while groups > 1:
        if groups % 2 == 1:
            tail = cur[:, (groups - 1) * c_out:]
            carry = tail if carry is None else jnp.maximum(carry, tail)
            groups -= 1
        half = groups // 2
        cur = jnp.maximum(cur[:, :half * c_out], cur[:, half * c_out:groups * c_out])
        groups = half
    if carry is not None:
        cur = jnp.maximum(cur, carry)
    return cur


def _cnn_max_kernel(rp_ref, wbig_ref, wfc_ref, out_ref, *, h_valid):
    # rp_ref:   (B_TILE, H_PAD, KROW_PAD)  bf16   row-im2col patches (lane-padded)
    # wbig_ref: (KROW_PAD, W*C_OUT)        bf16   conv-as-matmul weight
    # wfc_ref:  (C_OUT, OUT_LANES)         f32    fc weight, zero-padded to 128 lanes
    # out_ref:  (B_TILE, OUT_LANES)        f32
    b_tile, h_pad, krow = rp_ref.shape
    c_out = wfc_ref.shape[0]
    w = wbig_ref.shape[1] // c_out

    rp = rp_ref[...].reshape(b_tile * h_pad, krow)       # free: h_pad % 16 == 0 (bf16)
    maps = jnp.dot(rp, wbig_ref[...],
                   preferred_element_type=jnp.float32)   # (B*H, W*C_OUT) f32
    maps = maps.reshape(b_tile, h_pad, w * c_out)

    if h_pad != h_valid:
        # Padded (all-zero) rows must not participate in the max.
        row_ids = jax.lax.broadcasted_iota(jnp.int32, (b_tile, h_pad, 1), 1)
        maps = jnp.where(row_ids < h_valid, maps, -jnp.inf)

    mh = jnp.max(maps, axis=1)                           # (B, W*C_OUT) max over y
    pooled = _xgroup_tree_max(mh, c_out)                 # (B, C_OUT)   max over x

    out_ref[...] = jnp.dot(pooled, wfc_ref[...],
                           preferred_element_type=jnp.float32)    # (B, 128)


def _cnn_avg_kernel(x_ref, wavg_ref, out_ref):
    # Avg pool commutes with the (linear) conv + fc, so the whole network
    # collapses to  x_flat @ Wavg  with Wavg precomputed on the host.
    # x_ref:    (B_TILE, HW_PAD)     f32 flattened raw image (zero-padded)
    # wavg_ref: (HW_PAD, OUT_LANES)  f32
    out_ref[...] = jnp.dot(x_ref[...], wavg_ref[...],
                           preferred_element_type=jnp.float32)    # (B, 128)


# --------------------------------------------------------------------------
# Host-side reformulation helpers (cheap, run once per call under jit)
# --------------------------------------------------------------------------
def _row_patches(x):
    """x: (N, 1, H, W) -> rp (N, H, K*WP), rp[b,y,dy*WP+xx] = x_pad[b,y+dy,xx]."""
    n, c, h, w = x.shape
    xp = jnp.pad(x[:, 0].astype(jnp.float32), ((0, 0), (PAD, PAD), (PAD, PAD)))
    rows = [xp[:, dy:dy + h, :] for dy in range(K)]               # 13 x (N, H, WP)
    return jnp.concatenate(rows, axis=-1)                         # (N, H, K*WP)


def _conv_weight_matrix(conv_weight, w):
    """(C_OUT,1,K,K) -> Wbig (K*WP, w*C_OUT) so that conv == rp @ Wbig."""
    wp = w + 2 * PAD
    wt = jnp.transpose(conv_weight.reshape(C_OUT, K, K), (1, 2, 0))   # (K, K, C_OUT)
    wbig = jnp.zeros((K, wp, w, C_OUT), jnp.float32)
    for x in range(w):
        wbig = wbig.at[:, x:x + K, x, :].set(wt)
    return wbig.reshape(K * wp, w * C_OUT)


def _avg_fold_matrix(conv_weight, fc_weight, h, w):
    """Fold conv + mean-pool + fc into one (H*W, N_CLASSES) matrix.

    out[b, j] = sum_{r,s} x[b, r, s] * Wavg[r*W + s, j]
    where Wavg[r*W+s, j] = (1/(H*W)) * sum_c fc[j,c] * C[c,r,s] and
    C[c,r,s] = sum_{dy,dx} w[c,dy,dx] * 1[0 <= r+PAD-dy < H] * 1[0 <= s+PAD-dx < W].
    """
    wk = conv_weight.reshape(C_OUT, K, K).astype(jnp.float32)
    r = jnp.arange(h)[:, None]
    s = jnp.arange(w)[:, None]
    d = jnp.arange(K)[None, :]
    ay = ((r + PAD - d >= 0) & (r + PAD - d < h)).astype(jnp.float32)   # (H, K)
    ax = ((s + PAD - d >= 0) & (s + PAD - d < w)).astype(jnp.float32)   # (W, K)
    c_mat = jnp.einsum("cij,ri,sj->crs", wk, ay, ax)                    # (C_OUT, H, W)
    wavg = jnp.einsum("crs,jc->rsj", c_mat,
                      fc_weight.astype(jnp.float32)) / float(h * w)     # (H, W, 10)
    return wavg.reshape(h * w, N_CLASSES)


# --------------------------------------------------------------------------
# Forward pass
# --------------------------------------------------------------------------
@functools.partial(jax.jit, static_argnames=("max_pool", "b_tile", "patch_dtype"))
def cnn_forward(x, conv_weight, fc_weight, *, max_pool=True, b_tile=None,
                patch_dtype=jnp.bfloat16):
    """x: (N, 1, H, W); conv_weight: (64, 1, 13, 13); fc_weight: (10, 64).

    Returns logits (N, 10) == PyTorch CNN.forward(x).
    """
    n, _, h, w = x.shape
    wp = w + 2 * PAD
    krow = K * wp
    krow_pad = _round_up(krow, 128)        # lane-align the MXU contraction dim
    h_pad = _round_up(h, 16)               # bf16 sublane packing -> free reshape

    if b_tile is None:
        # Megacore/overhead-aware tile: aim for >= 4 grid steps when N permits
        # (2 TCs on v7x + DMA/compute overlap), cap at 128 so the f32 `maps`
        # intermediate (~8 MB) + double-buffered rp/Wbig fit v7x's 64 MiB VMEM.
        b_tile = max(8, min(128, _round_up(-(-n // 4), 8)))
    n_pad = _round_up(n, b_tile)

    grid = (n_pad // b_tile,)
    out_shape = jax.ShapeDtypeStruct((n_pad, OUT_LANES), jnp.float32)
    out_spec = pl.BlockSpec((b_tile, OUT_LANES), lambda b: (b, 0))
    cparams = pltpu.CompilerParams(dimension_semantics=("parallel",),
                                   vmem_limit_bytes=VMEM_LIMIT)

    if max_pool:
        # ---- conv-as-matmul + adaptive max pool + fc, all in one kernel ----
        rp = _row_patches(x).astype(patch_dtype)                  # (N, H, KROW)
        rp = jnp.pad(rp, ((0, n_pad - n), (0, h_pad - h), (0, krow_pad - krow)))
        wbig = _conv_weight_matrix(conv_weight.astype(jnp.float32), w)
        wbig = jnp.pad(wbig, ((0, krow_pad - krow), (0, 0)))      # (KROW_PAD, W*C)
        wfc = fc_weight.astype(jnp.float32).T                     # (C_OUT, 10)
        wfc_pad = jnp.zeros((C_OUT, OUT_LANES), jnp.float32).at[:, :N_CLASSES].set(wfc)

        kernel = functools.partial(_cnn_max_kernel, h_valid=h)
        out = pl.pallas_call(
            kernel,
            out_shape=out_shape,
            grid_spec=pltpu.PrefetchScalarGridSpec(
                num_scalar_prefetch=0,
                grid=grid,
                in_specs=[
                    pl.BlockSpec((b_tile, h_pad, krow_pad), lambda b: (b, 0, 0)),
                    pl.BlockSpec((krow_pad, w * C_OUT), lambda b: (0, 0)),   # shared
                    pl.BlockSpec((C_OUT, OUT_LANES), lambda b: (0, 0)),      # shared
                ],
                out_specs=out_spec),
            compiler_params=cparams,
        )(rp, wbig.astype(patch_dtype), wfc_pad)
    else:
        # ---- avg path: whole network folded into one (H*W, 10) matrix ----
        hw = h * w
        hw_pad = _round_up(hw, 128)
        x_flat = x[:, 0].reshape(n, hw).astype(jnp.float32)
        x_flat = jnp.pad(x_flat, ((0, n_pad - n), (0, hw_pad - hw)))
        wavg = _avg_fold_matrix(conv_weight, fc_weight, h, w)      # (HW, 10)
        wavg_pad = jnp.zeros((hw_pad, OUT_LANES), jnp.float32)
        wavg_pad = wavg_pad.at[:hw, :N_CLASSES].set(wavg)

        out = pl.pallas_call(
            _cnn_avg_kernel,
            out_shape=out_shape,
            grid_spec=pltpu.PrefetchScalarGridSpec(
                num_scalar_prefetch=0,
                grid=grid,
                in_specs=[
                    pl.BlockSpec((b_tile, hw_pad), lambda b: (b, 0)),
                    pl.BlockSpec((hw_pad, OUT_LANES), lambda b: (0, 0)),     # shared
                ],
                out_specs=out_spec),
            compiler_params=cparams,
        )(x_flat, wavg_pad)

    return out[:n, :N_CLASSES]


# --------------------------------------------------------------------------
# Demo / correctness check
# --------------------------------------------------------------------------
if __name__ == "__main__":
    key = jax.random.PRNGKey(0)
    kx, kw1, kw2 = jax.random.split(key, 3)

    # Small shapes consistent with the module: NCHW, in_channels=1.
    N, H, W = 2, 16, 16
    x = jax.random.normal(kx, (N, 1, H, W), dtype=jnp.float32)

    # The module zero-inits the conv weight (output would be trivially zero);
    # use deterministic random weights so the kernel is actually exercised.
    conv_weight = 0.05 * jax.random.normal(kw1, (C_OUT, 1, K, K), dtype=jnp.float32)
    fc_weight = 0.05 * jax.random.normal(kw2, (N_CLASSES, C_OUT), dtype=jnp.float32)

    # Ground-truth reference: direct f32 conv -> adaptive pool -> fc.
    maps_ref = jax.lax.conv_general_dilated(
        x, conv_weight, window_strides=(1, 1),
        padding=[(PAD, PAD), (PAD, PAD)],
        dimension_numbers=("NCHW", "OIHW", "NCHW"))               # (N, 64, H, W)

    for max_pool in (True, False):
        out = cnn_forward(x, conv_weight, fc_weight, max_pool=max_pool)
        out = jax.block_until_ready(out)
        assert out.shape == (N, N_CLASSES)
        if max_pool:
            pooled_ref = maps_ref.max(axis=(2, 3))
        else:
            pooled_ref = maps_ref.mean(axis=(2, 3))
        out_ref = pooled_ref @ fc_weight.T
        # bf16 streamed inputs (max path), f32 accumulation -> ~1e-2 budget.
        np.testing.assert_allclose(np.asarray(out), np.asarray(out_ref),
                                   rtol=1e-2, atol=1e-2)

    print("KERNEL_OK")
</pallas_src>

<mosaic_0001>
module attributes {stable_mosaic.version = 11 : i64} {
  func.func @_cnn_max_kernel(%arg0: i32, %arg1: memref<8x16x384xbf16, #tpu.memory_space<vmem>>, %arg2: memref<384x1024xbf16, #tpu.memory_space<vmem>>, %arg3: memref<64x128xf32, #tpu.memory_space<vmem>>, %arg4: memref<8x128xf32, #tpu.memory_space<vmem>>) attributes {dimension_semantics = [#tpu.dimension_semantics<parallel>], iteration_bounds = array<i64: 1>, scalar_prefetch = 0 : i64, scratch_operands = 0 : i64, tpu.core_type = #tpu.core_type<tc>, window_params = [{transform_indices = @transform_0, window_bounds = array<i64: 8, 16, 384>}, {pipeline_mode = #tpu.pipeline_mode<synchronous>, transform_indices = @transform_1, window_bounds = array<i64: 384, 1024>}, {pipeline_mode = #tpu.pipeline_mode<synchronous>, transform_indices = @transform_2, window_bounds = array<i64: 64, 128>}, {transform_indices = @transform_3, window_bounds = array<i64: 8, 128>}]} {
    %c0 = arith.constant 0 : index
    %c0_0 = arith.constant 0 : index
    %c0_1 = arith.constant 0 : index
    %0 = vector.load %arg1[%c0, %c0_0, %c0_1] : memref<8x16x384xbf16, #tpu.memory_space<vmem>>, vector<8x16x384xbf16>
    %1 = vector.shape_cast %0 : vector<8x16x384xbf16> to vector<128x384xbf16>
    %c0_2 = arith.constant 0 : index
    %c0_3 = arith.constant 0 : index
    %2 = vector.load %arg2[%c0_2, %c0_3] : memref<384x1024xbf16, #tpu.memory_space<vmem>>, vector<384x1024xbf16>
    %cst = arith.constant dense<0.000000e+00> : vector<128x1024xf32>
    %3 = tpu.matmul %1, %2, %cst {dimension_numbers = #tpu.dot_dimension_numbers<[1], [0], [0], [1], [0, 0, 1, 1], [], []>} : vector<128x384xbf16>, vector<384x1024xbf16>, vector<128x1024xf32> -> vector<128x1024xf32>
    %4 = vector.shape_cast %3 : vector<128x1024xf32> to vector<8x16x1024xf32>
    %cst_4 = arith.constant dense<0xFF800000> : vector<8x1024xf32>
    %5 = vector.multi_reduction <maximumf>, %4, %cst_4 [1] : vector<8x16x1024xf32> to vector<8x1024xf32>
    %6 = vector.extract_strided_slice %5 {offsets = [0, 0], sizes = [8, 512], strides = [1, 1]} : vector<8x1024xf32> to vector<8x512xf32>
    %7 = vector.extract_strided_slice %5 {offsets = [0, 512], sizes = [8, 512], strides = [1, 1]} : vector<8x1024xf32> to vector<8x512xf32>
    %8 = arith.maximumf %6, %7 : vector<8x512xf32>
    %9 = vector.extract_strided_slice %8 {offsets = [0, 0], sizes = [8, 256], strides = [1, 1]} : vector<8x512xf32> to vector<8x256xf32>
    %10 = vector.extract_strided_slice %8 {offsets = [0, 256], sizes = [8, 256], strides = [1, 1]} : vector<8x512xf32> to vector<8x256xf32>
    %11 = arith.maximumf %9, %10 : vector<8x256xf32>
    %12 = vector.extract_strided_slice %11 {offsets = [0, 0], sizes = [8, 128], strides = [1, 1]} : vector<8x256xf32> to vector<8x128xf32>
    %13 = vector.extract_strided_slice %11 {offsets = [0, 128], sizes = [8, 128], strides = [1, 1]} : vector<8x256xf32> to vector<8x128xf32>
    %14 = arith.maximumf %12, %13 : vector<8x128xf32>
    %15 = vector.extract_strided_slice %14 {offsets = [0, 0], sizes = [8, 64], strides = [1, 1]} : vector<8x128xf32> to vector<8x64xf32>
    %16 = vector.extract_strided_slice %14 {offsets = [0, 64], sizes = [8, 64], strides = [1, 1]} : vector<8x128xf32> to vector<8x64xf32>
    %17 = arith.maximumf %15, %16 : vector<8x64xf32>
    %c0_5 = arith.constant 0 : index
    %c0_6 = arith.constant 0 : index
    %18 = vector.load %arg3[%c0_5, %c0_6] : memref<64x128xf32, #tpu.memory_space<vmem>>, vector<64x128xf32>
    %cst_7 = arith.constant dense<0.000000e+00> : vector<8x128xf32>
    %19 = tpu.matmul %17, %18, %cst_7 {dimension_numbers = #tpu.dot_dimension_numbers<[1], [0], [0], [1], [0, 0, 1, 1], [], []>} : vector<8x64xf32>, vector<64x128xf32>, vector<8x128xf32> -> vector<8x128xf32>
    %c0_8 = arith.constant 0 : index
    %c0_9 = arith.constant 0 : index
    %20 = vector.load %arg4[%c0_8, %c0_9] : memref<8x128xf32, #tpu.memory_space<vmem>>, vector<8x128xf32>
    tpu.vector_store %arg4[%c0_8, %c0_9], %19 {strides = array<i32>} : memref<8x128xf32, #tpu.memory_space<vmem>>, vector<8x128xf32>,
    return
  }
  func.func @transform_0(%arg0: i32) -> (i32, i32, i32) {
    %c0_i32 = arith.constant 0 : i32
    %c0_i32_0 = arith.constant 0 : i32
    %c0_i32_1 = arith.constant 0 : i32
    return %arg0, %c0_i32, %c0_i32_0 : i32, i32, i32
  }
  func.func @transform_1(%arg0: i32) -> (i32, i32) {
    %c0_i32 = arith.constant 0 : i32
    %c0_i32_0 = arith.constant 0 : i32
    %c0_i32_1 = arith.constant 0 : i32
    return %c0_i32, %c0_i32_0 : i32, i32
  }
  func.func @transform_2(%arg0: i32) -> (i32, i32) {
    %c0_i32 = arith.constant 0 : i32
    %c0_i32_0 = arith.constant 0 : i32
    %c0_i32_1 = arith.constant 0 : i32
    return %c0_i32, %c0_i32_0 : i32, i32
  }
  func.func @transform_3(%arg0: i32) -> (i32, i32) {
    %c0_i32 = arith.constant 0 : i32
    %c0_i32_0 = arith.constant 0 : i32
    return %arg0, %c0_i32 : i32, i32
  }
}

</mosaic_0001>

<bundles_post_ra>
// kernel: cnn_forward.1
= control target key start
LH: loop header
LB: loop body
LE: loop exit
PB: predicated region body
PF: predicated region fallthrough
CT: control target
= control target key end

     0   :  { %v3180_v3 = vmov 0   ;;  %s3182_s7 = smov 64   ;;  %vm3183_vm0 = vmmov 0   ;;  %vm2792_vm1 = vcmask 1041409   ;;  %vm2795_vm2 = vcmask 1042434   ;;  %s4629_s1 = inlined_call_operand.vmem [shape: bf16[384,1024], index: 1, kind: input, shape index: {}]   ;;  %s4630_s0 = inlined_call_operand.vmem [shape: bf16[8,16,384], index: 0, kind: input, shape index: {}]   ;;  %s4631_s2 = inlined_call_operand.vmem [shape: f32[64,128], index: 2, kind: input, shape index: {}]   ;;  %s4632_s3 = inlined_call_operand.vmem [shape: f32[8,128], index: 3, kind: output, shape index: {}]  }
   0x1   :  { %v103_v0 = vld [vmem:[%s4629_s1 + $0x1c0] sm:$0xff]  ;;  %1472 = vmatprep.mubr.bf16.mxu1 %v3180_v3  ;;  %vm2798_vm3 = vcmask 1043459   ;;  %vm2801_vm4 = vcmask 1044484   ;;  %vm2804_vm5 = vcmask 1045509   ;;  %vm2807_vm6 = vcmask 1046534  }
   0x2   :  { %v107_v1 = vld [vmem:[%s4629_s1 + $0x1e0] sm:$0xff]  ;;  %vm2810_vm7 = vcmask 1047559   ;;  %vm2812_vm8 = vcmask 523264  }
   0x3   :  { %v95_v2 = vld [vmem:[%s4629_s1 + $0x180] sm:$0xff]  ;;  %v2971_v4 = vcombine.high %v103_v0, %v107_v1  ;;  %v2970_v5 = vcombine.low %v103_v0, %v107_v1 }
   0x4   :  { %v99_v6 = vld [vmem:[%s4629_s1 + $0x1a0] sm:$0xff] }
   0x5   :  { %v2963_v7 = vcombine.high %v95_v2, %v99_v6  ;;  %v87_v8 = vld [vmem:[%s4629_s1 + $0x140] sm:$0xff]  ;;  %1327 = vmatprep.subr.bf16.mxu0 %v2971_v4  ;;  %v2962_v10 = vcombine.low %v95_v2, %v99_v6 }
   0x6   :  { %v91_v9 = vld [vmem:[%s4629_s1 + $0x160] sm:$0xff]  ;;  %1328 = vmatpush1.bf16.msra.mxu0 %v2970_v5 }
   0x7   :  { %v231_v11 = vld [vmem:[%s4629_s1 + $0x5c0] sm:$0xff]  ;;  %1329 = vmatprep.subr.bf16.mxu0 %v2963_v7  ;;  %v2955_v12 = vcombine.high %v87_v8, %v91_v9  ;;  %v2954_v23 = vcombine.low %v87_v8, %v91_v9  ;;  %v104_v7 = vld [vmem:[%s4629_s1 + $0x1c8] sm:$0xff] }
   0x8   :  { %v79_v13 = vld [vmem:[%s4629_s1 + $0x100] sm:$0xff]  ;;  %v108_v8 = vld [vmem:[%s4629_s1 + $0x1e8] sm:$0xff] }
   0x9   :  { %v235_v14 = vld [vmem:[%s4629_s1 + $0x5e0] sm:$0xff] }
   0xa   :  { %v83_v15 = vld [vmem:[%s4629_s1 + $0x120] sm:$0xff]  ;;  %v3099_v16 = vcombine.high %v231_v11, %v235_v14  ;;  %v3098_v17 = vcombine.low %v231_v11, %v235_v14  ;;  %1330 = vmatpush1.bf16.msra.mxu0 %v2962_v10  ;;  %v2973_v14 = vcombine.high %v104_v7, %v108_v8 }
   0xb   :  { %v223_v18 = vld [vmem:[%s4629_s1 + $0x580] sm:$0xff]  ;;  %1331 = vmatprep.subr.bf16.mxu0 %v2955_v12  ;;  %v2947_v24 = vcombine.high %v79_v13, %v83_v15  ;;  %v2946_v31 = vcombine.low %v79_v13, %v83_v15  ;;  %v96_v15 = vld [vmem:[%s4629_s1 + $0x188] sm:$0xff] }
   0xc   :  { %v227_v19 = vld [vmem:[%s4629_s1 + $0x5a0] sm:$0xff]  ;;  %1440 = vmatprep.subr.bf16.mxu1 %v3099_v16  ;;  %v100_v16 = vld [vmem:[%s4629_s1 + $0x1a8] sm:$0xff] }
   0xd   :  { %v3091_v20 = vcombine.high %v223_v18, %v227_v19  ;;  %v215_v21 = vld [vmem:[%s4629_s1 + $0x540] sm:$0xff]  ;;  %1441 = vmatpush1.bf16.msra.mxu1 %v3098_v17  ;;  %v3090_v25 = vcombine.low %v223_v18, %v227_v19  ;;  %v3340_v18 = vld [vmem:[%s4630_s0 + $0x8] ss:$12 sps:$4 sm:$0xff]  }
   0xe   :  { %v219_v22 = vld [vmem:[%s4629_s1 + $0x560] sm:$0xff]  ;;  %1332 = vmatpush1.bf16.msra.mxu0 %v2954_v23  ;;  %v2965_v23 = vcombine.high %v96_v15, %v100_v16 }
   0xf   :  { %v71_v26 = vld [vmem:[%s4629_s1 + $0xc0] sm:$0xff]  ;;  %1442 = vmatprep.subr.bf16.mxu1 %v3091_v20  ;;  %v3083_v28 = vcombine.high %v215_v21, %v219_v22  ;;  %1333 = vmatprep.subr.bf16.mxu0 %v2947_v24  ;;  %v3082_v33 = vcombine.low %v215_v21, %v219_v22  ;;  %v2972_v21 = vcombine.low %v104_v7, %v108_v8  ;;  %v88_v24 = vld [vmem:[%s4629_s1 + $0x148] sm:$0xff]  ;;  %v3433_v7 = vld [vmem:[%s4630_s0 + $0x50] ss:$12 sps:$4 sm:$0xff]  }
  0x10   :  { %v75_v27 = vld [vmem:[%s4629_s1 + $0xe0] sm:$0xff] }
  0x11   :  { %v207_v29 = vld [vmem:[%s4629_s1 + $0x500] sm:$0xff]  ;;  %v2939_v32 = vcombine.high %v71_v26, %v75_v27  ;;  %1443 = vmatpush1.bf16.msra.mxu1 %v3090_v25  ;;  %v2938_v39 = vcombine.low %v71_v26, %v75_v27  ;;  %v92_v25 = vld [vmem:[%s4629_s1 + $0x168] sm:$0xff] }
  0x12   :  { %v211_v30 = vld [vmem:[%s4629_s1 + $0x520] sm:$0xff]  ;;  %1444 = vmatprep.subr.bf16.mxu1 %v3083_v28  ;;  %1334 = vmatpush1.bf16.msra.mxu0 %v2946_v31  ;;  %v2957_v31 = vcombine.high %v88_v24, %v92_v25 }
  0x13   :  { %v63_v34 = vld [vmem:[%s4629_s1 + $0x80] sm:$0xff]  ;;  %v3075_v36 = vcombine.high %v207_v29, %v211_v30  ;;  %1335 = vmatprep.subr.bf16.mxu0 %v2939_v32  ;;  %v3074_v42 = vcombine.low %v207_v29, %v211_v30  ;;  %v2964_v29 = vcombine.low %v96_v15, %v100_v16  ;;  %v80_v32 = vld [vmem:[%s4629_s1 + $0x108] sm:$0xff] }
  0x14   :  { %v67_v35 = vld [vmem:[%s4629_s1 + $0xa0] sm:$0xff]  ;;  %v172_v15 = vld [vmem:[%s4629_s1 + $0x3e8] sm:$0xff] }
  0x15   :  { %v199_v37 = vld [vmem:[%s4629_s1 + $0x4c0] sm:$0xff]  ;;  %v2931_v40 = vcombine.high %v63_v34, %v67_v35  ;;  %1445 = vmatpush1.bf16.msra.mxu1 %v3082_v33  ;;  %v2930_v48 = vcombine.low %v63_v34, %v67_v35  ;;  %v84_v33 = vld [vmem:[%s4629_s1 + $0x128] sm:$0xff] }
  0x16   :  { %v203_v38 = vld [vmem:[%s4629_s1 + $0x4e0] sm:$0xff]  ;;  %1446 = vmatprep.subr.bf16.mxu1 %v3075_v36  ;;  %1336 = vmatpush1.bf16.msra.mxu0 %v2938_v39 }
  0x17   :  { %v55_v41 = vld [vmem:[%s4629_s1 + $0x40] sm:$0xff]  ;;  %v3067_v44 = vcombine.high %v199_v37, %v203_v38  ;;  %1337 = vmatprep.subr.bf16.mxu0 %v2931_v40  ;;  %v3066_v51 = vcombine.low %v199_v37, %v203_v38  ;;  %v2956_v38 = vcombine.low %v88_v24, %v92_v25  ;;  %v2949_v40 = vcombine.high %v80_v32, %v84_v33  ;;  %v160_v24 = vld [vmem:[%s4629_s1 + $0x388] sm:$0xff] }
  0x18   :  { %v59_v43 = vld [vmem:[%s4629_s1 + $0x60] sm:$0xff]  ;;  %v164_v25 = vld [vmem:[%s4629_s1 + $0x3a8] sm:$0xff] }
  0x19   :  { %v3280_v45 = vld [vmem:[%s4630_s0 + $0x4] ss:$12 sps:$4 sm:$0xff]   ;;  %v2923_v49 = vcombine.high %v55_v41, %v59_v43  ;;  %1447 = vmatpush1.bf16.msra.mxu1 %v3074_v42  ;;  %v2922_v56 = vcombine.low %v55_v41, %v59_v43  ;;  %v3371_v35 = vld [vmem:[%s4630_s0 + $0x20] ss:$12 sps:$4 sm:$0xff]  }
  0x1a   :  { %v191_v46 = vld [vmem:[%s4629_s1 + $0x480] sm:$0xff]  ;;  %1359 = vmatprep.mubr.bf16.mxu0 %v3280_v45  ;;  %1448 = vmatprep.subr.bf16.mxu1 %v3067_v44  ;;  %v72_v41 = vld [vmem:[%s4629_s1 + $0xc8] sm:$0xff] }
  0x1b   :  { %v195_v47 = vld [vmem:[%s4629_s1 + $0x4a0] sm:$0xff]  ;;  %1338 = vmatpush1.bf16.msra.mxu0 %v2930_v48  ;;  %v76_v42 = vld [vmem:[%s4629_s1 + $0xe8] sm:$0xff] }
  0x1c   :  { %v47_v50 = vld [vmem:[%s4629_s1] sm:$0xff]  ;;  %v3059_v53 = vcombine.high %v191_v46, %v195_v47  ;;  %1339 = vmatprep.subr.bf16.mxu0 %v2923_v49  ;;  %v3058_v59 = vcombine.low %v191_v46, %v195_v47  ;;  %v2948_v46 = vcombine.low %v80_v32, %v84_v33  ;;  %v2941_v49 = vcombine.high %v72_v41, %v76_v42 }
  0x1d   :  { %v51_v52 = vld [vmem:[%s4629_s1 + $0x20] sm:$0xff]  ;;  %1449 = vmatpush1.bf16.msra.mxu1 %v3066_v51  ;;  %v68_v51 = vld [vmem:[%s4629_s1 + $0xa8] sm:$0xff]  ;;  %v3029_v32 = vcombine.high %v160_v24, %v164_v25 }
  0x1e   :  { %v183_v54 = vld [vmem:[%s4629_s1 + $0x440] sm:$0xff]  ;;  %v2915_v57 = vcombine.high %v47_v50, %v51_v52  ;;  %1450 = vmatprep.subr.bf16.mxu1 %v3059_v53  ;;  %v2914_v0 = vcombine.low %v47_v50, %v51_v52  ;;  %v64_v50 = vld [vmem:[%s4629_s1 + $0x88] sm:$0xff] }
  0x1f   :  { %v187_v55 = vld [vmem:[%s4629_s1 + $0x460] sm:$0xff]  ;;  %1340 = vmatpush1.bf16.msra.mxu0 %v2922_v56 }
  0x20   :  { %v167_v58 = vld [vmem:[%s4629_s1 + $0x3c0] sm:$0xff]  ;;  %v3051_v61 = vcombine.high %v183_v54, %v187_v55  ;;  %1341 = vmatprep.subr.bf16.mxu0 %v2915_v57  ;;  %v3050_v2 = vcombine.low %v183_v54, %v187_v55  ;;  %v2940_v55 = vcombine.low %v72_v41, %v76_v42  ;;  %v200_v41 = vld [vmem:[%s4629_s1 + $0x4c8] sm:$0xff] }
  0x21   :  { %v171_v60 = vld [vmem:[%s4629_s1 + $0x3e0] sm:$0xff]  ;;  %1451 = vmatpush1.bf16.msra.mxu1 %v3058_v59  ;;  %v56_v59 = vld [vmem:[%s4629_s1 + $0x48] sm:$0xff] }
  0x22   :  { %v175_v62 = vld [vmem:[%s4629_s1 + $0x400] sm:$0xff]  ;;  %v3035_v1 = vcombine.high %v167_v58, %v171_v60  ;;  %1452 = vmatprep.subr.bf16.mxu1 %v3051_v61  ;;  %v3034_v9 = vcombine.low %v167_v58, %v171_v60  ;;  %v2933_v58 = vcombine.high %v64_v50, %v68_v51  ;;  %v60_v60 = vld [vmem:[%s4629_s1 + $0x68] sm:$0xff] }
  0x23   :  { %v179_v63 = vld [vmem:[%s4629_s1 + $0x420] sm:$0xff]  ;;  %1342 = vmatpush1.bf16.msra.mxu0 %v2914_v0  ;;  %v232_v0 = vld [vmem:[%s4629_s1 + $0x5c8] sm:$0xff] }
  0x24   :  { %v159_v4 = vld [vmem:[%s4629_s1 + $0x380] sm:$0xff]  ;;  %v3043_v6 = vcombine.high %v175_v62, %v179_v63  ;;  %1343 = vmatprep.subr.bf16.mxu0 %v3035_v1  ;;  %v3042_v11 = vcombine.low %v175_v62, %v179_v63  ;;  %v2932_v63 = vcombine.low %v64_v50, %v68_v51  ;;  %v236_v1 = vld [vmem:[%s4629_s1 + $0x5e8] sm:$0xff] }
  0x25   :  { %v163_v5 = vld [vmem:[%s4629_s1 + $0x3a0] sm:$0xff]  ;;  %1453 = vmatpush1.bf16.msra.mxu1 %v3050_v2  ;;  %v2925_v2 = vcombine.high %v56_v59, %v60_v60  ;;  %v3101_v8 = vcombine.high %v232_v0, %v236_v1  ;;  %v3100_v16 = vcombine.low %v232_v0, %v236_v1  ;;  %v204_v42 = vld [vmem:[%s4629_s1 + $0x4e8] sm:$0xff] }
  0x26   :  { %v3027_v10 = vcombine.high %v159_v4, %v163_v5  ;;  %v151_v12 = vld [vmem:[%s4629_s1 + $0x340] sm:$0xff]  ;;  %1454 = vmatprep.subr.bf16.mxu1 %v3043_v6  ;;  %v3026_v17 = vcombine.low %v159_v4, %v163_v5  ;;  %v48_v4 = vld [vmem:[%s4629_s1 + $0x8] sm:$0xff] }
  0x27   :  { %v155_v13 = vld [vmem:[%s4629_s1 + $0x360] sm:$0xff]  ;;  %1344 = vmatpush2.bf16.msra.mxu0 %v3034_v9  ;;  %v52_v5 = vld [vmem:[%s4629_s1 + $0x28] sm:$0xff]  ;;  %v2924_v9 = vcombine.low %v56_v59, %v60_v60  ;;  %v3068_v59 = vcombine.low %v200_v41, %v204_v42 }
  0x28   :  { %1345 = vmatprep.subr.bf16.mxu0 %v3027_v10  ;;  %v3019_v19 = vcombine.high %v151_v12, %v155_v13  ;;  %v143_v20 = vld [vmem:[%s4629_s1 + $0x300] sm:$0xff]  ;;  %v3018_v26 = vcombine.low %v151_v12, %v155_v13  ;;  %v224_v10 = vld [vmem:[%s4629_s1 + $0x588] sm:$0xff]  ;;  %v2917_v12 = vcombine.high %v48_v4, %v52_v5 }
  0x29   :  { %1455 = vmatpush1.bf16.msra.mxu1 %v3042_v11  ;;  %v147_v22 = vld [vmem:[%s4629_s1 + $0x320] sm:$0xff]  ;;  %v228_v11 = vld [vmem:[%s4629_s1 + $0x5a8] sm:$0xff] }
  0x2a   :  { %1553 = vmatprep.subr.bf16.mxu1 %v2973_v14  ;;  %v3011_v27 = vcombine.high %v143_v20, %v147_v22  ;;  %v135_v28 = vld [vmem:[%s4629_s1 + $0x2c0] sm:$0xff]  ;;  %v3010_v34 = vcombine.low %v143_v20, %v147_v22  ;;  %v168_v14 = vld [vmem:[%s4629_s1 + $0x3c8] sm:$0xff]  ;;  %v2916_v20 = vcombine.low %v48_v4, %v52_v5 }
  0x2b   :  { %1346 = vmatpush2.bf16.msra.mxu0 %v3026_v17  ;;  %v139_v30 = vld [vmem:[%s4629_s1 + $0x2e0] sm:$0xff]  ;;  %v3455_v17 = vld [vmem:[%s4630_s0 + $0x1c] ss:$12 sps:$4 sm:$0xff]  }
  0x2c   :  { %1473 = vmatmul.mubr.bf16.vlgmr.msra.gmra.mxu1 %v3340_v18  ;;  %1347 = vmatprep.subr.bf16.mxu0 %v3019_v19  ;;  %v3003_v36 = vcombine.high %v135_v28, %v139_v30  ;;  %v127_v37 = vld [vmem:[%s4629_s1 + $0x280] sm:$0xff]  ;;  %v3002_v43 = vcombine.low %v135_v28, %v139_v30  ;;  %v3093_v19 = vcombine.high %v224_v10, %v228_v11  ;;  %v220_v22 = vld [vmem:[%s4629_s1 + $0x568] sm:$0xff] }
  0x2d   :  { %1554 = vmatpush1.bf16.msra.mxu1 %v2972_v21  ;;  %1482 = vmatprep.mubr.bf16.mxu1 %v3180_v3  ;;  %v131_v39 = vld [vmem:[%s4629_s1 + $0x2a0] sm:$0xff]  ;;  %v216_v21 = vld [vmem:[%s4629_s1 + $0x548] sm:$0xff] }
  0x2e   :  { %1555 = vmatprep.subr.bf16.mxu1 %v2965_v23  ;;  %v2995_v44 = vcombine.high %v127_v37, %v131_v39  ;;  %v119_v47 = vld [vmem:[%s4629_s1 + $0x240] sm:$0xff]  ;;  %v2994_v52 = vcombine.low %v127_v37, %v131_v39  ;;  %v3037_v23 = vcombine.high %v168_v14, %v172_v15  ;;  %v3085_v28 = vcombine.high %v216_v21, %v220_v22  ;;  %v208_v30 = vld [vmem:[%s4629_s1 + $0x508] sm:$0xff] }
  0x2f   :  { %1348 = vmatpush2.bf16.msra.mxu0 %v3018_v26  ;;  %v123_v48 = vld [vmem:[%s4629_s1 + $0x260] sm:$0xff]  ;;  %v3092_v26 = vcombine.low %v224_v10, %v228_v11  ;;  %v188_v0 = vld [vmem:[%s4629_s1 + $0x468] sm:$0xff] }
  0x30   :  { %1349 = vmatprep.subr.bf16.mxu0 %v3011_v27  ;;  %v3402_v53 = vld [vmem:[%s4630_s0 + $0x38] ss:$12 sps:$4 sm:$0xff]   ;;  %v2987_v54 = vcombine.high %v119_v47, %v123_v48  ;;  %v2986_v61 = vcombine.low %v119_v47, %v123_v48  ;;  %v3444_v13 = vld [vmem:[%s4630_s0] ss:$12 sps:$4 sm:$0xff]   ;;  %v3476_v27 = vld [vmem:[%s4630_s0 + $0x68] ss:$12 sps:$4 sm:$0xff]  }
  0x31   :  { %1556 = vmatpush1.bf16.msra.mxu1 %v2964_v29  ;;  %v111_v56 = vld [vmem:[%s4629_s1 + $0x200] sm:$0xff]  ;;  %v3036_v29 = vcombine.low %v168_v14, %v172_v15  ;;  %v128_v1 = vld [vmem:[%s4629_s1 + $0x288] sm:$0xff] }
  0x32   :  { %1557 = vmatprep.subr.bf16.mxu1 %v2957_v31  ;;  %v115_v57 = vld [vmem:[%s4629_s1 + $0x220] sm:$0xff]  ;;  %v212_v31 = vld [vmem:[%s4629_s1 + $0x528] sm:$0xff] }
  0x33   :  { %1350 = vmatpush2.bf16.msra.mxu0 %v3010_v34  ;;  %v2979_v62 = vcombine.high %v111_v56, %v115_v57  ;;  %v2978_v6 = vcombine.low %v111_v56, %v115_v57  ;;  %v3487_v33 = vld [vmem:[%s4630_s0 + $0x18] ss:$12 sps:$4 sm:$0xff]   ;;  %v152_v34 = vld [vmem:[%s4629_s1 + $0x348] sm:$0xff]  ;;  %v3498_v37 = vld [vmem:[%s4630_s0 + $0x34] ss:$12 sps:$4 sm:$0xff]   ;;  %v3077_v39 = vcombine.high %v208_v30, %v212_v31  ;;  %v3076_v47 = vcombine.low %v208_v30, %v212_v31 }
  0x34   :  { %1483 = vmatmul.mubr.bf16.gmra.mxu1 %v3371_v35  ;;  %1351 = vmatprep.subr.bf16.mxu0 %v3003_v36  ;;  %v156_v36 = vld [vmem:[%s4629_s1 + $0x368] sm:$0xff]  ;;  %v3562_v5 = vld [vmem:[%s4630_s0 + $0x98] ss:$12 sps:$4 sm:$0xff]  }
  0x35   :  { %1558 = vmatpush1.bf16.msra.mxu1 %v2956_v38  ;;  %1492 = vmatprep.mubr.bf16.mxu1 %v3180_v3  ;;  %v3084_v38 = vcombine.low %v216_v21, %v220_v22  ;;  %v3519_v48 = vld [vmem:[%s4630_s0 + $0x80] ss:$12 sps:$4 sm:$0xff]   ;;  %v3020_v50 = vcombine.low %v152_v34, %v156_v36 }
  0x36   :  { %1559 = vmatprep.subr.bf16.mxu1 %v2949_v40  ;;  %v3028_v40 = vcombine.low %v160_v24, %v164_v25  ;;  %v136_v56 = vld [vmem:[%s4629_s1 + $0x2c8] sm:$0xff]  ;;  %v3598_v25 = vld [vmem:[%s4629_s1 + $0x5d0] sm:$0xff] }
  0x37   :  { %1352 = vmatpush2.bf16.msra.mxu0 %v3002_v43  ;;  %v3021_v43 = vcombine.high %v152_v34, %v156_v36  ;;  %v140_v57 = vld [vmem:[%s4629_s1 + $0x2e8] sm:$0xff]  ;;  %v105_v36 = vld [vmem:[%s4629_s1 + $0x1d0] sm:$0xff] }
  0x38   :  { %1353 = vmatprep.subr.bf16.mxu0 %v2995_v44  ;;  %v144_v44 = vld [vmem:[%s4629_s1 + $0x308] sm:$0xff] }
  0x39   :  { %1560 = vmatpush1.bf16.msra.mxu1 %v2948_v46  ;;  %v148_v46 = vld [vmem:[%s4629_s1 + $0x328] sm:$0xff] }
  0x3a   :  { %1561 = vmatprep.subr.bf16.mxu1 %v2941_v49  ;;  %v3069_v49 = vcombine.high %v200_v41, %v204_v42  ;;  %v3013_v51 = vcombine.high %v144_v44, %v148_v46  ;;  %v3012_v60 = vcombine.low %v144_v44, %v148_v46  ;;  %v176_v10 = vld [vmem:[%s4629_s1 + $0x408] sm:$0xff]  ;;  %v97_v42 = vld [vmem:[%s4629_s1 + $0x190] sm:$0xff] }
  0x3b   :  { %1354 = vmatpush2.bf16.msra.mxu0 %v2994_v52  ;;  %v192_v52 = vld [vmem:[%s4629_s1 + $0x488] sm:$0xff] }
  0x3c   :  { %1493 = vmatmul.mubr.bf16.gmra.mxu1 %v3402_v53  ;;  %1355 = vmatprep.subr.bf16.mxu0 %v2987_v54  ;;  %v196_v54 = vld [vmem:[%s4629_s1 + $0x4a8] sm:$0xff] }
  0x3d   :  { %1562 = vmatpush1.bf16.msra.mxu1 %v2940_v55  ;;  %1502 = vmatprep.mubr.bf16.mxu1 %v3180_v3  ;;  %v3530_v55 = vld [vmem:[%s4630_s0 + $0x30] ss:$12 sps:$4 sm:$0xff]   ;;  %v3060_v4 = vcombine.low %v192_v52, %v196_v54  ;;  %v180_v11 = vld [vmem:[%s4629_s1 + $0x428] sm:$0xff] }
  0x3e   :  { %1563 = vmatprep.subr.bf16.mxu1 %v2933_v58  ;;  %v3541_v58 = vld [vmem:[%s4630_s0 + $0x4c] ss:$12 sps:$4 sm:$0xff]   ;;  %v3045_v21 = vcombine.high %v176_v10, %v180_v11 }
  0x3f   :  { %1356 = vmatpush2.bf16.msra.mxu0 %v2986_v61  ;;  %v3061_v61 = vcombine.high %v192_v52, %v196_v54  ;;  %v120_v14 = vld [vmem:[%s4629_s1 + $0x248] sm:$0xff] }
  0x40   :  { %1357 = vmatprep.subr.bf16.mxu0 %v2979_v62  ;;  %v3005_v62 = vcombine.high %v136_v56, %v140_v57  ;;  %v124_v15 = vld [vmem:[%s4629_s1 + $0x268] sm:$0xff] }
  0x41   :  { %1564 = vmatpush1.bf16.msra.mxu1 %v2932_v63  ;;  %v184_v63 = vld [vmem:[%s4629_s1 + $0x448] sm:$0xff]  ;;  %v2989_v22 = vcombine.high %v120_v14, %v124_v15  ;;  %v2988_v30 = vcombine.low %v120_v14, %v124_v15  ;;  %v61_v14 = vld [vmem:[%s4629_s1 + $0x70] sm:$0xff] }
  0x42   :  { %1565 = vmatprep.subr.bf16.mxu1 %v2925_v2  ;;  %v132_v2 = vld [vmem:[%s4629_s1 + $0x2a8] sm:$0xff] }
  0x43   :  { %1358 = vmatpush2.bf16.msra.mxu0 %v2978_v6  ;;  %v3004_v6 = vcombine.low %v136_v56, %v140_v57  ;;  %v116_v24 = vld [vmem:[%s4629_s1 + $0x228] sm:$0xff]  ;;  %v81_v56 = vld [vmem:[%s4629_s1 + $0x110] sm:$0xff] }
  0x44   :  { %1503 = vmatmul.mubr.bf16.gmra.mxu1 %v3433_v7  ;;  %1666 = vmatprep.subr.bf16.mxu0 %v3101_v8  ;;  %v3053_v8 = vcombine.high %v184_v63, %v188_v0  ;;  %v3616_v34 = vld [vmem:[%s4630_s0 + $0x60] ss:$12 sps:$4 sm:$0xff]   ;;  %v85_v57 = vld [vmem:[%s4629_s1 + $0x130] sm:$0xff] }
  0x45   :  { %1566 = vmatpush1.bf16.msra.mxu1 %v2924_v9  ;;  %1512 = vmatprep.mubr.bf16.mxu1 %v3180_v3  ;;  %v2997_v9 = vcombine.high %v128_v1, %v132_v2 }
  0x46   :  { %1567 = vmatprep.subr.bf16.mxu1 %v2917_v12  ;;  %1360 = vmatmul.mubr.bf16.vlgmr.msra.gmra.mxu0 %v3444_v13  ;;  %v3573_v12 = vld [vmem:[%s4630_s0 + $0x48] ss:$12 sps:$4 sm:$0xff]  }
  0x47   :  { %1667 = vmatpush1.bf16.msra.mxu0 %v3100_v16  ;;  %1369 = vmatprep.mubr.bf16.mxu0 %v3455_v17  ;;  %v3584_v16 = vld [vmem:[%s4630_s0 + $0x64] ss:$12 sps:$4 sm:$0xff]  }
  0x48   :  { %1668 = vmatprep.subr.bf16.mxu0 %v3093_v19  ;;  %v3052_v19 = vcombine.low %v184_v63, %v188_v0  ;;  %v77_v63 = vld [vmem:[%s4629_s1 + $0xf0] sm:$0xff]  ;;  %v3679_v0 = vld [vmem:[%s4630_s0 + $0xac] ss:$12 sps:$4 sm:$0xff]  }
  0x49   :  { %1568 = vmatpush1.bf16.msra.mxu1 %v2916_v20  ;;  %v2996_v20 = vcombine.low %v128_v1, %v132_v2  ;;  %v2950_v1 = vcombine.low %v81_v56, %v85_v57 }
  0x4a   :  { %1569 = vmatprep.subr.bf16.mxu1 %v3037_v23  ;;  %v112_v23 = vld [vmem:[%s4629_s1 + $0x208] sm:$0xff] }
  0x4b   :  { %1669 = vmatpush1.bf16.msra.mxu0 %v3092_v26  ;;  %v3603_v26 = vld [vmem:[%s4629_s1 + $0x5f0] sm:$0xff]  ;;  %v2981_v31 = vcombine.high %v112_v23, %v116_v24 }
  0x4c   :  { %1513 = vmatmul.mubr.bf16.gmra.mxu1 %v3476_v27  ;;  %1670 = vmatprep.subr.bf16.mxu0 %v3085_v28  ;;  %v3609_v28 = vld [vmem:[%s4630_s0 + $0xb0] ss:$12 sps:$4 sm:$0xff]  }
  0x4d   :  { %1570 = vmatpush2.bf16.msra.mxu1 %v3036_v29  ;;  %1522 = vmatprep.mubr.bf16.mxu1 %v3180_v3  ;;  %v3044_v29 = vcombine.low %v176_v10, %v180_v11  ;;  %v3694_v10 = vld [vmem:[%s4630_s0 + $0xa8] ss:$12 sps:$4 sm:$0xff]  }
  0x4e   :  { %1571 = vmatprep.subr.bf16.mxu1 %v3029_v32  ;;  %1370 = vmatmul.mubr.bf16.gmra.mxu0 %v3487_v33  ;;  %v3103_v32 = vcombine.high %v3598_v25, %v3603_v26  ;;  %v57_v11 = vld [vmem:[%s4629_s1 + $0x50] sm:$0xff] }
  0x4f   :  { %1379 = vmatprep.mubr.bf16.mxu0 %v3498_v37  ;;  %1671 = vmatpush1.bf16.msra.mxu0 %v3084_v38  ;;  %v109_v38 = vld [vmem:[%s4629_s1 + $0x1f0] sm:$0xff] }
  0x50   :  { %1672 = vmatprep.subr.bf16.mxu0 %v3077_v39  ;;  %v3627_v39 = vld [vmem:[%s4630_s0 + $0x7c] ss:$12 sps:$4 sm:$0xff]   ;;  %v2975_v41 = vcombine.high %v105_v36, %v109_v38  ;;  %v2974_v44 = vcombine.low %v105_v36, %v109_v38 }
  0x51   :  { %1572 = vmatpush2.bf16.msra.mxu1 %v3028_v40  ;;  %v2980_v40 = vcombine.low %v112_v23, %v116_v24  ;;  %v225_v23 = vld [vmem:[%s4629_s1 + $0x590] sm:$0xff] }
  0x52   :  { %1573 = vmatprep.subr.bf16.mxu1 %v3021_v43  ;;  %v101_v43 = vld [vmem:[%s4629_s1 + $0x1b0] sm:$0xff] }
  0x53   :  { %1673 = vmatpush1.bf16.msra.mxu0 %v3076_v47  ;;  %v2967_v46 = vcombine.high %v97_v42, %v101_v43  ;;  %v3642_v47 = vld [vmem:[%s4630_s0 + $0x78] ss:$12 sps:$4 sm:$0xff]   ;;  %v2966_v52 = vcombine.low %v97_v42, %v101_v43  ;;  %v229_v24 = vld [vmem:[%s4629_s1 + $0x5b0] sm:$0xff] }
  0x54   :  { %1523 = vmatmul.mubr.bf16.gmra.mxu1 %v3519_v48  ;;  %1674 = vmatprep.subr.bf16.mxu0 %v3069_v49  ;;  %v89_v49 = vld [vmem:[%s4629_s1 + $0x150] sm:$0xff]  ;;  %v3095_v36 = vcombine.high %v225_v23, %v229_v24  ;;  %v3094_v43 = vcombine.low %v225_v23, %v229_v24 }
  0x55   :  { %1574 = vmatpush2.bf16.msra.mxu1 %v3020_v50  ;;  %1532 = vmatprep.mubr.bf16.mxu1 %v3180_v3  ;;  %v93_v50 = vld [vmem:[%s4629_s1 + $0x170] sm:$0xff] }
  0x56   :  { %1575 = vmatprep.subr.bf16.mxu1 %v3013_v51  ;;  %1380 = vmatmul.mubr.bf16.gmra.mxu0 %v3530_v55  ;;  %v3653_v51 = vld [vmem:[%s4630_s0 + $0x94] ss:$12 sps:$4 sm:$0xff]   ;;  %v2959_v54 = vcombine.high %v89_v49, %v93_v50 }
  0x57   :  { %1389 = vmatprep.mubr.bf16.mxu0 %v3541_v58  ;;  %1675 = vmatpush1.bf16.msra.mxu0 %v3068_v59  ;;  %v2958_v59 = vcombine.low %v89_v49, %v93_v50  ;;  %v209_v49 = vld [vmem:[%s4629_s1 + $0x510] sm:$0xff] }
  0x58   :  { %1676 = vmatprep.subr.bf16.mxu0 %v3061_v61  ;;  %v3668_v61 = vld [vmem:[%s4630_s0 + $0x90] ss:$12 sps:$4 sm:$0xff]  }
  0x59   :  { %1576 = vmatpush2.bf16.msra.mxu1 %v3012_v60  ;;  %v2951_v60 = vcombine.high %v81_v56, %v85_v57  ;;  %v213_v50 = vld [vmem:[%s4629_s1 + $0x530] sm:$0xff] }
  0x5a   :  { %1577 = vmatprep.subr.bf16.mxu1 %v3005_v62  ;;  %v73_v62 = vld [vmem:[%s4629_s1 + $0xd0] sm:$0xff] }
  0x5b   :  { %1677 = vmatpush1.bf16.msra.mxu0 %v3060_v4  ;;  %v2943_v2 = vcombine.high %v73_v62, %v77_v63  ;;  %v65_v4 = vld [vmem:[%s4629_s1 + $0x90] sm:$0xff] }
  0x5c   :  { %1533 = vmatmul.mubr.bf16.gmra.mxu1 %v3562_v5  ;;  %1678 = vmatprep.subr.bf16.mxu0 %v3053_v8  ;;  %v2942_v8 = vcombine.low %v73_v62, %v77_v63  ;;  %v157_v56 = vld [vmem:[%s4629_s1 + $0x370] sm:$0xff] }
  0x5d   :  { %1578 = vmatpush2.bf16.msra.mxu1 %v3004_v6  ;;  %1542 = vmatprep.mubr.bf16.mxu1 %v3180_v3  ;;  %v69_v6 = vld [vmem:[%s4629_s1 + $0xb0] sm:$0xff] }
  0x5e   :  { %1579 = vmatprep.subr.bf16.mxu1 %v2997_v9  ;;  %1390 = vmatmul.mubr.bf16.gmra.mxu0 %v3573_v12  ;;  %v2935_v9 = vcombine.high %v65_v4, %v69_v6  ;;  %v2934_v15 = vcombine.low %v65_v4, %v69_v6  ;;  %v201_v62 = vld [vmem:[%s4629_s1 + $0x4d0] sm:$0xff]  ;;  %v3078_v6 = vcombine.low %v209_v49, %v213_v50 }
  0x5f   :  { %1399 = vmatprep.mubr.bf16.mxu0 %v3584_v16  ;;  %1679 = vmatpush1.bf16.msra.mxu0 %v3052_v19  ;;  %v2927_v19 = vcombine.high %v57_v11, %v61_v14  ;;  %v205_v63 = vld [vmem:[%s4629_s1 + $0x4f0] sm:$0xff] }
  0x60   :  { %1680 = vmatprep.subr.bf16.mxu0 %v3045_v21  ;;  %v53_v21 = vld [vmem:[%s4629_s1 + $0x30] sm:$0xff] }
  0x61   :  { %1580 = vmatpush2.bf16.msra.mxu1 %v2996_v20  ;;  %v49_v20 = vld [vmem:[%s4629_s1 + $0x10] sm:$0xff] }
  0x62   :  { %1581 = vmatprep.subr.bf16.mxu1 %v2989_v22  ;;  %v2926_v22 = vcombine.low %v57_v11, %v61_v14  ;;  %v2918_v38 = vcombine.low %v49_v20, %v53_v21  ;;  %v149_v4 = vld [vmem:[%s4629_s1 + $0x330] sm:$0xff] }
  0x63   :  { %1681 = vmatpush1.bf16.msra.mxu0 %v3044_v29  ;;  %v2919_v29 = vcombine.high %v49_v20, %v53_v21  ;;  %v193_v14 = vld [vmem:[%s4629_s1 + $0x490] sm:$0xff]  ;;  %v3070_v21 = vcombine.low %v201_v62, %v205_v63 }
  0x64   :  { %1543 = vmatmul.mubr.bf16.gmra.mxu1 %v3609_v28  ;;  %1892 = vmatprep.subr.bf16.mxu0 %v3103_v32  ;;  %v3102_v32 = vcombine.low %v3598_v25, %v3603_v26  ;;  %v161_v25 = vld [vmem:[%s4629_s1 + $0x390] sm:$0xff] }
  0x65   :  { %1582 = vmatpush2.bf16.msra.mxu1 %v2988_v30  ;;  %1585 = vmatprep.mubr.bf16.mxu1 %v3280_v45  ;;  %v169_v30 = vld [vmem:[%s4629_s1 + $0x3d0] sm:$0xff] }
  0x66   :  { %1583 = vmatprep.subr.bf16.mxu1 %v2981_v31  ;;  %1400 = vmatmul.mubr.bf16.gmra.mxu0 %v3616_v34  ;;  %v173_v31 = vld [vmem:[%s4629_s1 + $0x3f0] sm:$0xff] }
  0x67   :  { %1409 = vmatprep.mubr.bf16.mxu0 %v3627_v39  ;;  %v3039_v42 = vcombine.high %v169_v30, %v173_v31  ;;  %v165_v26 = vld [vmem:[%s4629_s1 + $0x3b0] sm:$0xff] }
  0x68   :  { %v141_v20 = vld [vmem:[%s4629_s1 + $0x2f0] sm:$0xff] }
  0x69   :  { %1584 = vmatpush2.bf16.msra.mxu1 %v2980_v40  ;;  %v217_v40 = vld [vmem:[%s4629_s1 + $0x550] sm:$0xff] }
  0x6a   :  { %1779 = vmatprep.subr.bf16.mxu1 %v2975_v41  ;;  %v221_v41 = vld [vmem:[%s4629_s1 + $0x570] sm:$0xff] }
  0x6b   :  { %v3086_v57 = vcombine.low %v217_v40, %v221_v41 }
  0x6c   :  { %1586 = vmatmul.mubr.bf16.vlgmr.msra.gmra.mxu1 %v3444_v13 }
  0x6d   :  { %1780 = vmatpush1.bf16.msra.mxu1 %v2974_v44  ;;  %1595 = vmatprep.mubr.bf16.mxu1 %v3455_v17  ;;  %v3087_v44 = vcombine.high %v217_v40, %v221_v41 }
  0x6e   :  { %1781 = vmatprep.subr.bf16.mxu1 %v2967_v46  ;;  %1410 = vmatmul.mubr.bf16.gmra.mxu0 %v3642_v47  ;;  %v3038_v46 = vcombine.low %v169_v30, %v173_v31  ;;  %v189_v30 = vld [vmem:[%s4629_s1 + $0x470] sm:$0xff] }
  0x6f   :  { %1419 = vmatprep.mubr.bf16.mxu0 %v3653_v51  ;;  %v129_v31 = vld [vmem:[%s4629_s1 + $0x290] sm:$0xff] }
  0x71   :  { %1782 = vmatpush1.bf16.msra.mxu1 %v2966_v52  ;;  %v3031_v52 = vcombine.high %v161_v25, %v165_v26 }
  0x72   :  { %1783 = vmatprep.subr.bf16.mxu1 %v2959_v54  ;;  %v153_v54 = vld [vmem:[%s4629_s1 + $0x350] sm:$0xff] }
  0x74   :  { %1596 = vmatmul.mubr.bf16.gmra.mxu1 %v3487_v33 }
  0x75   :  { %1784 = vmatpush1.bf16.msra.mxu1 %v2958_v59  ;;  %1605 = vmatprep.mubr.bf16.mxu1 %v3498_v37  ;;  %v3079_v59 = vcombine.high %v209_v49, %v213_v50 }
  0x76   :  { %1785 = vmatprep.subr.bf16.mxu1 %v2951_v60  ;;  %1420 = vmatmul.mubr.bf16.gmra.mxu0 %v3668_v61  ;;  %v3030_v60 = vcombine.low %v161_v25, %v165_v26  ;;  %v181_v25 = vld [vmem:[%s4629_s1 + $0x430] sm:$0xff] }
  0x77   :  { %1429 = vmatprep.mubr.bf16.mxu0 %v3679_v0  ;;  %v121_v26 = vld [vmem:[%s4629_s1 + $0x250] sm:$0xff] }
  0x79   :  { %1786 = vmatpush1.bf16.msra.mxu1 %v2950_v1  ;;  %v3023_v1 = vcombine.high %v153_v54, %v157_v56 }
  0x7a   :  { %1787 = vmatprep.subr.bf16.mxu1 %v2943_v2  ;;  %v145_v2 = vld [vmem:[%s4629_s1 + $0x310] sm:$0xff] }
  0x7b   :  { %v3015_v11 = vcombine.high %v145_v2, %v149_v4 }
  0x7c   :  { %1606 = vmatmul.mubr.bf16.gmra.mxu1 %v3530_v55 }
  0x7d   :  { %1788 = vmatpush1.bf16.msra.mxu1 %v2942_v8  ;;  %1615 = vmatprep.mubr.bf16.mxu1 %v3541_v58  ;;  %v3071_v8 = vcombine.high %v201_v62, %v205_v63 }
  0x7e   :  { %1789 = vmatprep.subr.bf16.mxu1 %v2935_v9  ;;  %1430 = vmatmul.mubr.bf16.gmra.mxu0 %v3694_v10  ;;  %v3022_v9 = vcombine.low %v153_v54, %v157_v56  ;;  %v117_v54 = vld [vmem:[%s4629_s1 + $0x230] sm:$0xff]  ;;  %v3822_v56 = vld [vmem:[%s4629_s1 + $0x5d8] sm:$0xff] }
  0x7f   :  { %1698 = vmatprep.mubr.bf16.mxu0 %v3180_v3 }
  0x81   :  { %1790 = vmatpush1.bf16.msra.mxu1 %v2934_v15  ;;  %v197_v15 = vld [vmem:[%s4629_s1 + $0x4b0] sm:$0xff] }
  0x82   :  { %1791 = vmatprep.subr.bf16.mxu1 %v2927_v19  ;;  %v137_v19 = vld [vmem:[%s4629_s1 + $0x2d0] sm:$0xff]  ;;  %v3063_v23 = vcombine.high %v193_v14, %v197_v15 }
  0x83   :  { %v3007_v24 = vcombine.high %v137_v19, %v141_v20 }
  0x84   :  { %1616 = vmatmul.mubr.bf16.gmra.mxu1 %v3573_v12 }
  0x85   :  { %1792 = vmatpush1.bf16.msra.mxu1 %v2926_v22  ;;  %1625 = vmatprep.mubr.bf16.mxu1 %v3584_v16  ;;  %v3014_v22 = vcombine.low %v145_v2, %v149_v4  ;;  %v110_v2 = vld [vmem:[%s4629_s1 + $0x1f8] sm:$0xff] }
  0x86   :  { %1793 = vmatprep.subr.bf16.mxu1 %v2919_v29  ;;  %1699 = vmatmul.mubr.bf16.vlgmr.msra.gmra.mxu0 %v3340_v18  ;;  %v185_v29 = vld [vmem:[%s4629_s1 + $0x450] sm:$0xff] }
  0x87   :  { %1893 = vmatpush1.bf16.msra.mxu0 %v3102_v32  ;;  %1708 = vmatprep.mubr.bf16.mxu0 %v3180_v3  ;;  %v133_v32 = vld [vmem:[%s4629_s1 + $0x2b0] sm:$0xff]  ;;  %v3055_v40 = vcombine.high %v185_v29, %v189_v30 }
  0x88   :  { %1894 = vmatprep.subr.bf16.mxu0 %v3095_v36  ;;  %v3062_v36 = vcombine.low %v193_v14, %v197_v15  ;;  %v2999_v41 = vcombine.high %v129_v31, %v133_v32  ;;  %v94_v15 = vld [vmem:[%s4629_s1 + $0x178] sm:$0xff] }
  0x89   :  { %1794 = vmatpush1.bf16.msra.mxu1 %v2918_v38  ;;  %v3006_v38 = vcombine.low %v137_v19, %v141_v20 }
  0x8a   :  { %1795 = vmatprep.subr.bf16.mxu1 %v3039_v42  ;;  %v177_v42 = vld [vmem:[%s4629_s1 + $0x410] sm:$0xff] }
  0x8b   :  { %1895 = vmatpush1.bf16.msra.mxu0 %v3094_v43  ;;  %v125_v43 = vld [vmem:[%s4629_s1 + $0x270] sm:$0xff]  ;;  %v3047_v49 = vcombine.high %v177_v42, %v181_v25 }
  0x8c   :  { %1626 = vmatmul.mubr.bf16.gmra.mxu1 %v3616_v34  ;;  %1896 = vmatprep.subr.bf16.mxu0 %v3087_v44  ;;  %v3054_v44 = vcombine.low %v185_v29, %v189_v30  ;;  %v2991_v50 = vcombine.high %v121_v26, %v125_v43  ;;  %v74_v29 = vld [vmem:[%s4629_s1 + $0xd8] sm:$0xff] }
  0x8d   :  { %1796 = vmatpush2.bf16.msra.mxu1 %v3038_v46  ;;  %1635 = vmatprep.mubr.bf16.mxu1 %v3627_v39  ;;  %v2998_v46 = vcombine.low %v129_v31, %v133_v32  ;;  %v78_v30 = vld [vmem:[%s4629_s1 + $0xf8] sm:$0xff] }
  0x8e   :  { %1797 = vmatprep.subr.bf16.mxu1 %v3031_v52  ;;  %1709 = vmatmul.mubr.bf16.gmra.mxu0 %v3371_v35  ;;  %v113_v52 = vld [vmem:[%s4629_s1 + $0x210] sm:$0xff]  ;;  %v2945_v32 = vcombine.high %v74_v29, %v78_v30 }
  0x8f   :  { %1718 = vmatprep.mubr.bf16.mxu0 %v3180_v3  ;;  %1897 = vmatpush1.bf16.msra.mxu0 %v3086_v57  ;;  %v3827_v57 = vld [vmem:[%s4629_s1 + $0x5f8] sm:$0xff]  ;;  %v2983_v62 = vcombine.high %v113_v52, %v117_v54  ;;  %v2982_v4 = vcombine.low %v113_v52, %v117_v54 }
  0x90   :  { %1898 = vmatprep.subr.bf16.mxu0 %v3079_v59  ;;  %v3046_v59 = vcombine.low %v177_v42, %v181_v25  ;;  %v3105_v63 = vcombine.high %v3822_v56, %v3827_v57  ;;  %v58_v42 = vld [vmem:[%s4629_s1 + $0x58] sm:$0xff] }
  0x91   :  { %1798 = vmatpush2.bf16.msra.mxu1 %v3030_v60  ;;  %v2990_v60 = vcombine.low %v121_v26, %v125_v43  ;;  %v62_v25 = vld [vmem:[%s4629_s1 + $0x78] sm:$0xff] }
  0x92   :  { %1799 = vmatprep.subr.bf16.mxu1 %v3023_v1  ;;  %v106_v1 = vld [vmem:[%s4629_s1 + $0x1d8] sm:$0xff]  ;;  %v2929_v43 = vcombine.high %v58_v42, %v62_v25 }
  0x93   :  { %1899 = vmatpush1.bf16.msra.mxu0 %v3078_v6  ;;  %v2977_v6 = vcombine.high %v106_v1, %v110_v2  ;;  %v230_v52 = vld [vmem:[%s4629_s1 + $0x5b8] sm:$0xff] }
  0x94   :  { %1636 = vmatmul.mubr.bf16.gmra.mxu1 %v3642_v47  ;;  %1900 = vmatprep.subr.bf16.mxu0 %v3071_v8  ;;  %v98_v8 = vld [vmem:[%s4629_s1 + $0x198] sm:$0xff] }
  0x95   :  { %1800 = vmatpush2.bf16.msra.mxu1 %v3022_v9  ;;  %1645 = vmatprep.mubr.bf16.mxu1 %v3653_v51  ;;  %v102_v9 = vld [vmem:[%s4629_s1 + $0x1b8] sm:$0xff] }
  0x96   :  { %1801 = vmatprep.subr.bf16.mxu1 %v3015_v11  ;;  %1719 = vmatmul.mubr.bf16.gmra.mxu0 %v3402_v53  ;;  %v2976_v11 = vcombine.low %v106_v1, %v110_v2  ;;  %v2969_v14 = vcombine.high %v98_v8, %v102_v9  ;;  %v2968_v19 = vcombine.low %v98_v8, %v102_v9  ;;  %v218_v2 = vld [vmem:[%s4629_s1 + $0x558] sm:$0xff] }
  0x97   :  { %1728 = vmatprep.mubr.bf16.mxu0 %v3180_v3  ;;  %1901 = vmatpush1.bf16.msra.mxu0 %v3070_v21  ;;  %v82_v21 = vld [vmem:[%s4629_s1 + $0x118] sm:$0xff] }
  0x98   :  { %1902 = vmatprep.subr.bf16.mxu0 %v3063_v23 }
  0x99   :  { %1802 = vmatpush2.bf16.msra.mxu1 %v3014_v22  ;;  %v86_v22 = vld [vmem:[%s4629_s1 + $0x138] sm:$0xff] }
  0x9a   :  { %1803 = vmatprep.subr.bf16.mxu1 %v3007_v24  ;;  %v2953_v24 = vcombine.high %v82_v21, %v86_v22  ;;  %v2952_v31 = vcombine.low %v82_v21, %v86_v22 }
  0x9b   :  { %1903 = vmatpush1.bf16.msra.mxu0 %v3062_v36  ;;  %v66_v36 = vld [vmem:[%s4629_s1 + $0x98] sm:$0xff] }
  0x9c   :  { %1646 = vmatmul.mubr.bf16.gmra.mxu1 %v3668_v61  ;;  %1904 = vmatprep.subr.bf16.mxu0 %v3055_v40  ;;  %v2944_v40 = vcombine.low %v74_v29, %v78_v30  ;;  %v146_v30 = vld [vmem:[%s4629_s1 + $0x318] sm:$0xff] }
  0x9d   :  { %1804 = vmatpush2.bf16.msra.mxu1 %v3006_v38  ;;  %1655 = vmatprep.mubr.bf16.mxu1 %v3679_v0  ;;  %v70_v38 = vld [vmem:[%s4629_s1 + $0xb8] sm:$0xff] }
  0x9e   :  { %1805 = vmatprep.subr.bf16.mxu1 %v2999_v41  ;;  %1729 = vmatmul.mubr.bf16.gmra.mxu0 %v3433_v7  ;;  %v2937_v41 = vcombine.high %v66_v36, %v70_v38  ;;  %v2936_v26 = vcombine.low %v66_v36, %v70_v38 }
  0x9f   :  { %1738 = vmatprep.mubr.bf16.mxu0 %v3180_v3  ;;  %1905 = vmatpush1.bf16.msra.mxu0 %v3054_v44  ;;  %v50_v44 = vld [vmem:[%s4629_s1 + $0x18] sm:$0xff] }
  0xa0   :  { %1906 = vmatprep.subr.bf16.mxu0 %v3047_v49  ;;  %v2928_v49 = vcombine.low %v58_v42, %v62_v25  ;;  %v138_v42 = vld [vmem:[%s4629_s1 + $0x2d8] sm:$0xff] }
  0xa1   :  { %1806 = vmatpush2.bf16.msra.mxu1 %v2998_v46  ;;  %v54_v46 = vld [vmem:[%s4629_s1 + $0x38] sm:$0xff] }
  0xa2   :  { %1807 = vmatprep.subr.bf16.mxu1 %v2991_v50  ;;  %v226_v50 = vld [vmem:[%s4629_s1 + $0x598] sm:$0xff]  ;;  %v2921_v54 = vcombine.high %v50_v44, %v54_v46  ;;  %v2920_v1 = vcombine.low %v50_v44, %v54_v46 }
  0xa3   :  { %1907 = vmatpush1.bf16.msra.mxu0 %v3046_v59  ;;  %v170_v59 = vld [vmem:[%s4629_s1 + $0x3d8] sm:$0xff]  ;;  %v3096_v8 = vcombine.low %v226_v50, %v230_v52 }
  0xa4   :  { %1656 = vmatmul.mubr.bf16.gmra.mxu1 %v3694_v10  ;;  %2118 = vmatprep.subr.bf16.mxu0 %v3105_v63  ;;  %v3097_v63 = vcombine.high %v226_v50, %v230_v52  ;;  %v142_v25 = vld [vmem:[%s4629_s1 + $0x2f8] sm:$0xff] }
  0xa5   :  { %1808 = vmatpush2.bf16.msra.mxu1 %v2990_v60  ;;  %1811 = vmatprep.mubr.bf16.mxu1 %v3280_v45  ;;  %v90_v45 = vld [vmem:[%s4629_s1 + $0x158] sm:$0xff]  ;;  %v3009_v46 = vcombine.high %v138_v42, %v142_v25 }
  0xa6   :  { %1809 = vmatprep.subr.bf16.mxu1 %v2983_v62  ;;  %1739 = vmatmul.mubr.bf16.gmra.mxu0 %v3476_v27  ;;  %v2961_v20 = vcombine.high %v90_v45, %v94_v15  ;;  %v2960_v23 = vcombine.low %v90_v45, %v94_v15  ;;  %v174_v60 = vld [vmem:[%s4629_s1 + $0x3f8] sm:$0xff]  ;;  %v3104_v62 = vcombine.low %v3822_v56, %v3827_v57 }
  0xa7   :  { %1748 = vmatprep.mubr.bf16.mxu0 %v3180_v3  ;;  %v162_v56 = vld [vmem:[%s4629_s1 + $0x398] sm:$0xff] }
  0xa8   :  { %v166_v57 = vld [vmem:[%s4629_s1 + $0x3b8] sm:$0xff] }
  0xa9   :  { %1810 = vmatpush2.bf16.msra.mxu1 %v2982_v4  ;;  %v222_v4 = vld [vmem:[%s4629_s1 + $0x578] sm:$0xff]  ;;  %v3033_v45 = vcombine.high %v162_v56, %v166_v57  ;;  %v3032_v22 = vcombine.low %v162_v56, %v166_v57 }
  0xaa   :  { %2005 = vmatprep.subr.bf16.mxu1 %v2977_v6  ;;  %v3041_v6 = vcombine.high %v170_v59, %v174_v60  ;;  %v3089_v9 = vcombine.high %v218_v2, %v222_v4  ;;  %v154_v15 = vld [vmem:[%s4629_s1 + $0x358] sm:$0xff] }
  0xab   :  { %v190_v50 = vld [vmem:[%s4629_s1 + $0x478] sm:$0xff] }
  0xac   :  { %1812 = vmatmul.mubr.bf16.vlgmr.msra.gmra.mxu1 %v3444_v13  ;;  %v130_v52 = vld [vmem:[%s4629_s1 + $0x298] sm:$0xff] }
  0xad   :  { %2006 = vmatpush1.bf16.msra.mxu1 %v2976_v11  ;;  %1821 = vmatprep.mubr.bf16.mxu1 %v3455_v17  ;;  %v3040_v11 = vcombine.low %v170_v59, %v174_v60  ;;  %v3008_v60 = vcombine.low %v138_v42, %v142_v25 }
  0xae   :  { %2007 = vmatprep.subr.bf16.mxu1 %v2969_v14  ;;  %1749 = vmatmul.mubr.bf16.gmra.mxu0 %v3519_v48  ;;  %v214_v14 = vld [vmem:[%s4629_s1 + $0x538] sm:$0xff] }
  0xaf   :  { %1758 = vmatprep.mubr.bf16.mxu0 %v3180_v3 }
  0xb1   :  { %2008 = vmatpush1.bf16.msra.mxu1 %v2968_v19  ;;  %v158_v19 = vld [vmem:[%s4629_s1 + $0x378] sm:$0xff] }
  0xb2   :  { %2009 = vmatprep.subr.bf16.mxu1 %v2961_v20  ;;  %v3088_v20 = vcombine.low %v218_v2, %v222_v4  ;;  %v3025_v29 = vcombine.high %v154_v15, %v158_v19  ;;  %v3024_v38 = vcombine.low %v154_v15, %v158_v19  ;;  %v122_v2 = vld [vmem:[%s4629_s1 + $0x258] sm:$0xff]  ;;  %v3171_v15 = vld [vmem:[%s4630_s0 + $0x4] ss:$12 sps:$4 sm:$0xff]  }
  0xb3   :  { %v126_v4 = vld [vmem:[%s4629_s1 + $0x278] sm:$0xff] }
  0xb4   :  { %1822 = vmatmul.mubr.bf16.gmra.mxu1 %v3487_v33 }
  0xb5   :  { %2010 = vmatpush1.bf16.msra.mxu1 %v2960_v23  ;;  %1831 = vmatprep.mubr.bf16.mxu1 %v3498_v37  ;;  %v202_v23 = vld [vmem:[%s4629_s1 + $0x4d8] sm:$0xff] }
  0xb6   :  { %2011 = vmatprep.subr.bf16.mxu1 %v2953_v24  ;;  %1759 = vmatmul.mubr.bf16.gmra.mxu0 %v3562_v5  ;;  %v206_v24 = vld [vmem:[%s4629_s1 + $0x4f8] sm:$0xff] }
  0xb7   :  { %1768 = vmatprep.mubr.bf16.mxu0 %v3180_v3  ;;  %v3073_v36 = vcombine.high %v202_v23, %v206_v24 }
  0xb9   :  { %2012 = vmatpush1.bf16.msra.mxu1 %v2952_v31  ;;  %v150_v31 = vld [vmem:[%s4629_s1 + $0x338] sm:$0xff] }
  0xba   :  { %2013 = vmatprep.subr.bf16.mxu1 %v2945_v32 }
  0xbc   :  { %1832 = vmatmul.mubr.bf16.gmra.mxu1 %v3530_v55 }
  0xbd   :  { %2014 = vmatpush1.bf16.msra.mxu1 %v2944_v40  ;;  %1841 = vmatprep.mubr.bf16.mxu1 %v3541_v58  ;;  %v3017_v40 = vcombine.high %v146_v30, %v150_v31 }
  0xbe   :  { %2015 = vmatprep.subr.bf16.mxu1 %v2937_v41  ;;  %1769 = vmatmul.mubr.bf16.gmra.mxu0 %v3609_v28  ;;  %v198_v41 = vld [vmem:[%s4629_s1 + $0x4b8] sm:$0xff] }
  0xbf   :  { %1924 = vmatprep.mubr.bf16.mxu0 %v3180_v3 }
  0xc1   :  { %2016 = vmatpush1.bf16.msra.mxu1 %v2936_v26  ;;  %v3072_v26 = vcombine.low %v202_v23, %v206_v24 }
  0xc2   :  { %2017 = vmatprep.subr.bf16.mxu1 %v2929_v43  ;;  %v3016_v43 = vcombine.low %v146_v30, %v150_v31 }
  0xc4   :  { %1842 = vmatmul.mubr.bf16.gmra.mxu1 %v3573_v12 }
  0xc5   :  { %2018 = vmatpush1.bf16.msra.mxu1 %v2928_v49  ;;  %1851 = vmatprep.mubr.bf16.mxu1 %v3584_v16  ;;  %v186_v49 = vld [vmem:[%s4629_s1 + $0x458] sm:$0xff] }
  0xc6   :  { %2019 = vmatprep.subr.bf16.mxu1 %v2921_v54  ;;  %1925 = vmatmul.mubr.bf16.vlgmr.msra.gmra.mxu0 %v3340_v18  ;;  %v210_v18 = vld [vmem:[%s4629_s1 + $0x518] sm:$0xff] }
  0xc7   :  { %2119 = vmatpush1.bf16.msra.mxu0 %v3104_v62  ;;  %1934 = vmatprep.mubr.bf16.mxu0 %v3180_v3  ;;  %v3081_v21 = vcombine.high %v210_v18, %v214_v14  ;;  %v3080_v32 = vcombine.low %v210_v18, %v214_v14  ;;  %v134_v54 = vld [vmem:[%s4629_s1 + $0x2b8] sm:$0xff]  ;;  %v3057_v62 = vcombine.high %v186_v49, %v190_v50 }
  0xc8   :  { %2120 = vmatprep.subr.bf16.mxu0 %v3097_v63  ;;  %v3001_v63 = vcombine.high %v130_v52, %v134_v54  ;;  %v3000_v56 = vcombine.low %v130_v52, %v134_v54  ;;  %v2992_v14 = vcombine.low %v122_v2, %v126_v4 }
  0xc9   :  { %2020 = vmatpush1.bf16.msra.mxu1 %v2920_v1  ;;  %v182_v1 = vld [vmem:[%s4629_s1 + $0x438] sm:$0xff] }
  0xca   :  { %2021 = vmatprep.subr.bf16.mxu1 %v3041_v6  ;;  %v3056_v6 = vcombine.low %v186_v49, %v190_v50 }
  0xcb   :  { %2121 = vmatpush1.bf16.msra.mxu0 %v3096_v8  ;;  %v2993_v8 = vcombine.high %v122_v2, %v126_v4 }
  0xcc   :  { %1852 = vmatmul.mubr.bf16.gmra.mxu1 %v3616_v34  ;;  %2122 = vmatprep.subr.bf16.mxu0 %v3089_v9  ;;  %v114_v9 = vld [vmem:[%s4629_s1 + $0x218] sm:$0xff] }
  0xcd   :  { %2022 = vmatpush2.bf16.msra.mxu1 %v3040_v11  ;;  %1861 = vmatprep.mubr.bf16.mxu1 %v3627_v39  ;;  %v118_v11 = vld [vmem:[%s4629_s1 + $0x238] sm:$0xff] }
  0xce   :  { %2023 = vmatprep.subr.bf16.mxu1 %v3033_v45  ;;  %1935 = vmatmul.mubr.bf16.gmra.mxu0 %v3371_v35  ;;  %v194_v35 = vld [vmem:[%s4629_s1 + $0x498] sm:$0xff]  ;;  %v2985_v45 = vcombine.high %v114_v9, %v118_v11 }
  0xcf   :  { %1944 = vmatprep.mubr.bf16.mxu0 %v3180_v3  ;;  %2123 = vmatpush1.bf16.msra.mxu0 %v3088_v20  ;;  %v3065_v44 = vcombine.high %v194_v35, %v198_v41  ;;  %v3064_v59 = vcombine.low %v194_v35, %v198_v41 }
  0xd0   :  { %2124 = vmatprep.subr.bf16.mxu0 %v3081_v21 }
  0xd1   :  { %2024 = vmatpush2.bf16.msra.mxu1 %v3032_v22 }
  0xd2   :  { %2025 = vmatprep.subr.bf16.mxu1 %v3025_v29 }
  0xd3   :  { %2125 = vmatpush1.bf16.msra.mxu0 %v3080_v32 }
  0xd4   :  { %1862 = vmatmul.mubr.bf16.gmra.mxu1 %v3642_v47  ;;  %2126 = vmatprep.subr.bf16.mxu0 %v3073_v36 }
  0xd5   :  { %2026 = vmatpush2.bf16.msra.mxu1 %v3024_v38  ;;  %1871 = vmatprep.mubr.bf16.mxu1 %v3653_v51 }
  0xd6   :  { %2027 = vmatprep.subr.bf16.mxu1 %v3017_v40  ;;  %1945 = vmatmul.mubr.bf16.gmra.mxu0 %v3402_v53  ;;  %v178_v53 = vld [vmem:[%s4629_s1 + $0x418] sm:$0xff] }
  0xd7   :  { %1954 = vmatprep.mubr.bf16.mxu0 %v3180_v3  ;;  %2127 = vmatpush1.bf16.msra.mxu0 %v3072_v26  ;;  %v3049_v57 = vcombine.high %v178_v53, %v182_v1  ;;  %v3048_v18 = vcombine.low %v178_v53, %v182_v1  ;;  %v3173_v26 = vld [vmem:[%s4630_s0 + $0x20] ss:$12 sps:$4 sm:$0xff]   ;;  %v3174_v1 = vld [vmem:[%s4630_s0 + $0x38] ss:$12 sps:$4 sm:$0xff]  }
  0xd8   :  { %2128 = vmatprep.subr.bf16.mxu0 %v3065_v44 }
  0xd9   :  { %2028 = vmatpush2.bf16.msra.mxu1 %v3016_v43 }
  0xda   :  { %2029 = vmatprep.subr.bf16.mxu1 %v3009_v46 }
  0xdb   :  { %2129 = vmatpush1.bf16.msra.mxu0 %v3064_v59 }
  0xdc   :  { %1872 = vmatmul.mubr.bf16.gmra.mxu1 %v3668_v61  ;;  %2130 = vmatprep.subr.bf16.mxu0 %v3057_v62 }
  0xdd   :  { %2030 = vmatpush2.bf16.msra.mxu1 %v3008_v60  ;;  %1881 = vmatprep.mubr.bf16.mxu1 %v3679_v0 }
  0xde   :  { %2031 = vmatprep.subr.bf16.mxu1 %v3001_v63  ;;  %1955 = vmatmul.mubr.bf16.gmra.mxu0 %v3433_v7  ;;  %v2984_v7 = vcombine.low %v114_v9, %v118_v11 }
  0xdf   :  { %1964 = vmatprep.mubr.bf16.mxu0 %v3180_v3  ;;  %2131 = vmatpush1.bf16.msra.mxu0 %v3056_v6 }
  0xe0   :  { %2132 = vmatprep.subr.bf16.mxu0 %v3049_v57 }
  0xe1   :  { %2032 = vmatpush2.bf16.msra.mxu1 %v3000_v56 }
  0xe2   :  { %2033 = vmatprep.subr.bf16.mxu1 %v2993_v8 }
  0xe3   :  { %2133 = vmatpush1.bf16.msra.mxu0 %v3048_v18 }
  0xe4   :  { %1882 = vmatmul.mubr.bf16.gmra.mxu1 %v3694_v10 }
  0xe5   :  { %2034 = vmatpush2.bf16.msra.mxu1 %v2992_v14  ;;  %2037 = vmatprep.mubr.bf16.mxu1 %v3171_v15  ;;  %v3175_v15 = vld [vmem:[%s4630_s0 + $0x50] ss:$12 sps:$4 sm:$0xff]  }
  0xe6   :  { %2035 = vmatprep.subr.bf16.mxu1 %v2985_v45  ;;  %1965 = vmatmul.mubr.bf16.gmra.mxu0 %v3476_v27 }
  0xe7   :  { %1974 = vmatprep.mubr.bf16.mxu0 %v3180_v3 }
  0xe9   :  { %2036 = vmatpush2.bf16.msra.mxu1 %v2984_v7 }
  0xec   :  { %v1474_v19 = vpop.f32.mrf.mxu1  ;;  %2038 = vmatmul.mubr.bf16.vlgmr.msra.gmra.mxu1 %v3444_v13 }
  0xed   :  { %2047 = vmatprep.mubr.bf16.mxu1 %v3455_v17 }
  0xee   :  { %v1476_v20 = vpop.f32.mrf.mxu1  ;;  %1975 = vmatmul.mubr.bf16.gmra.mxu0 %v3519_v48 }
  0xef   :  { %1984 = vmatprep.mubr.bf16.mxu0 %v3180_v3 }
  0xf0   :  { %v1478_v21 = vpop.f32.mrf.mxu1 }
  0xf2   :  { %v1480_v22 = vpop.f32.mrf.mxu1 }
  0xf4   :  { %v1484_v23 = vpop.f32.mrf.mxu1  ;;  %2048 = vmatmul.mubr.bf16.gmra.mxu1 %v3487_v33 }
  0xf5   :  { %2057 = vmatprep.mubr.bf16.mxu1 %v3498_v37 }
  0xf6   :  { %v1486_v27 = vpop.f32.mrf.mxu1  ;;  %1985 = vmatmul.mubr.bf16.gmra.mxu0 %v3562_v5 }
  0xf7   :  { %1994 = vmatprep.mubr.bf16.mxu0 %v3180_v3 }
  0xf8   :  { %v1488_v13 = vpop.f32.mrf.mxu1 }
  0xfa   :  { %v1490_v24 = vpop.f32.mrf.mxu1 }
  0xfc   :  { %v1494_v17 = vpop.f32.mrf.mxu1  ;;  %2058 = vmatmul.mubr.bf16.gmra.mxu1 %v3530_v55  ;;  %v3172_v55 = vld [vmem:[%s4630_s0 + $0x8] ss:$12 sps:$4 sm:$0xff]  }
  0xfd   :  { %2067 = vmatprep.mubr.bf16.mxu1 %v3541_v58 }
  0xfe   :  { %v1496_v48 = vpop.f32.mrf.mxu1  ;;  %1995 = vmatmul.mubr.bf16.gmra.mxu0 %v3609_v28 }
  0xff   :  { %2150 = vmatprep.mubr.bf16.mxu0 %v3180_v3 }
 0x100   :  { %v1498_v33 = vpop.f32.mrf.mxu1 }
 0x102   :  { %v1500_v29 = vpop.f32.mrf.mxu1 }
 0x104   :  { %v4022_v37 = vpop.f32.mrf.mxu1  ;;  %2068 = vmatmul.mubr.bf16.gmra.mxu1 %v3573_v12 }
 0x105   :  { %2077 = vmatprep.mubr.bf16.mxu1 %v3584_v16 }
 0x106   :  { %v4026_v5 = vpop.f32.mrf.mxu1  ;;  %v1361_v30 = vpop.f32.mrf.mxu0  ;;  %2151 = vmatmul.mubr.bf16.vlgmr.msra.gmra.mxu0 %v3172_v55 }
 0x107   :  { %v1475_v58 = vadd.f32 %v1474_v19, %v1361_v30  ;;  %2160 = vmatprep.mubr.bf16.mxu0 %v3180_v3 }
 0x108   :  { %v1508_v28 = vpop.f32.mrf.mxu1  ;;  %v1363_v31 = vpop.f32.mrf.mxu0 }
 0x109   :  { %v1477_v32 = vadd.f32 %v1476_v20, %v1363_v31 }
 0x10a   :  { %v4032_v36 = vpop.f32.mrf.mxu1  ;;  %v1365_v38 = vpop.f32.mrf.mxu0 }
 0x10b   :  { %v1479_v12 = vadd.f32 %v1478_v21, %v1365_v38 }
 0x10c   :  { %v4034_v40 = vpop.f32.mrf.mxu1  ;;  %2078 = vmatmul.mubr.bf16.gmra.mxu1 %v3616_v34  ;;  %v1367_v16 = vpop.f32.mrf.mxu0 }
 0x10d   :  { %2087 = vmatprep.mubr.bf16.mxu1 %v3627_v39  ;;  %v4038_v35 = vmax.f32 %v1475_v58, %v1479_v12  ;;  %v1481_v41 = vadd.f32 %v1480_v22, %v1367_v16 }
 0x10e   :  { %v4040_v42 = vpop.f32.mrf.mxu1  ;;  %v1371_v25 = vpop.f32.mrf.mxu0  ;;  %2161 = vmatmul.mubr.bf16.gmra.mxu0 %v3173_v26  ;;  %v3177_v26 = vld [vmem:[%s4630_s0 + $0x80] ss:$12 sps:$4 sm:$0xff]  }
 0x10f   :  { %v4045_v43 = vmax.f32 %v1477_v32, %v1481_v41  ;;  %v1485_v44 = vadd.f32 %v1484_v23, %v1371_v25  ;;  %2170 = vmatprep.mubr.bf16.mxu0 %v3180_v3 }
 0x110   :  { %v1518_v34 = vpop.f32.mrf.mxu1  ;;  %v1373_v46 = vpop.f32.mrf.mxu0 }
 0x111   :  { %v1487_v49 = vadd.f32 %v1486_v27, %v1373_v46 }
 0x112   :  { %v1520_v39 = vpop.f32.mrf.mxu1  ;;  %v1375_v50 = vpop.f32.mrf.mxu0 }
 0x113   :  { %v1489_v52 = vadd.f32 %v1488_v13, %v1375_v50 }
 0x114   :  { %v4048_v54 = vpop.f32.mrf.mxu1  ;;  %2088 = vmatmul.mubr.bf16.gmra.mxu1 %v3642_v47  ;;  %v1377_v59 = vpop.f32.mrf.mxu0 }
 0x115   :  { %2097 = vmatprep.mubr.bf16.mxu1 %v3653_v51  ;;  %v4052_v60 = vmax.f32 %v1485_v44, %v1489_v52  ;;  %v1491_v62 = vadd.f32 %v1490_v24, %v1377_v59 }
 0x116   :  { %v4054_v63 = vpop.f32.mrf.mxu1  ;;  %v1381_v53 = vpop.f32.mrf.mxu0  ;;  %2171 = vmatmul.mubr.bf16.gmra.mxu0 %v3174_v1 }
 0x117   :  { %v4059_v2 = vmax.f32 %v1487_v49, %v1491_v62  ;;  %2180 = vmatprep.mubr.bf16.mxu0 %v3180_v3  ;;  %v1495_v47 = vadd.f32 %v1494_v17, %v1381_v53 }
 0x118   :  { %v1528_v4 = vpop.f32.mrf.mxu1  ;;  %v1383_v6 = vpop.f32.mrf.mxu0 }
 0x119   :  { %v1497_v56 = vadd.f32 %v1496_v48, %v1383_v6  ;;  %v3178_v6 = vld [vmem:[%s4630_s0 + $0x98] ss:$12 sps:$4 sm:$0xff]  }
 0x11a   :  { %v1530_v51 = vpop.f32.mrf.mxu1  ;;  %v1385_v57 = vpop.f32.mrf.mxu0 }
 0x11b   :  { %v1499_v8 = vadd.f32 %v1498_v33, %v1385_v57 }
 0x11c   :  { %v4062_v9 = vpop.f32.mrf.mxu1  ;;  %2098 = vmatmul.mubr.bf16.gmra.mxu1 %v3668_v61  ;;  %v1387_v11 = vpop.f32.mrf.mxu0 }
 0x11d   :  { %2107 = vmatprep.mubr.bf16.mxu1 %v3679_v0  ;;  %v4066_v18 = vmax.f32 %v1495_v47, %v1499_v8  ;;  %v1501_v14 = vadd.f32 %v1500_v29, %v1387_v11 }
 0x11e   :  { %v1536_v45 = vpop.f32.mrf.mxu1  ;;  %v1391_v7 = vpop.f32.mrf.mxu0  ;;  %2181 = vmatmul.mubr.bf16.gmra.mxu0 %v3175_v15 }
 0x11f   :  { %v4071_v19 = vmax.f32 %v1497_v56, %v1501_v14  ;;  %2190 = vmatprep.mubr.bf16.mxu0 %v3180_v3  ;;  %v1505_v61 = vadd.f32 %v4022_v37, %v1391_v7  ;;  %v3176_v37 = vld [vmem:[%s4630_s0 + $0x68] ss:$12 sps:$4 sm:$0xff]  }
 0x120   :  { %v1538_v20 = vpop.f32.mrf.mxu1  ;;  %v1393_v21 = vpop.f32.mrf.mxu0 }
 0x121   :  { %v1507_v0 = vadd.f32 %v4026_v5, %v1393_v21 }
 0x122   :  { %v1540_v22 = vpop.f32.mrf.mxu1  ;;  %v1395_v23 = vpop.f32.mrf.mxu0 }
 0x123   :  { %v1509_v27 = vadd.f32 %v1508_v28, %v1395_v23  ;;  %v3179_v23 = vld [vmem:[%s4630_s0 + $0xb0] ss:$12 sps:$4 sm:$0xff]  }
 0x124   :  { %v1544_v13 = vpop.f32.mrf.mxu1  ;;  %2108 = vmatmul.mubr.bf16.gmra.mxu1 %v3694_v10  ;;  %v1397_v24 = vpop.f32.mrf.mxu0 }
 0x125   :  { %v4077_v17 = vmax.f32 %v1505_v61, %v1509_v27  ;;  %v1511_v48 = vadd.f32 %v4032_v36, %v1397_v24 }
 0x126   :  { %v1546_v33 = vpop.f32.mrf.mxu1  ;;  %v1401_v29 = vpop.f32.mrf.mxu0  ;;  %2191 = vmatmul.mubr.bf16.gmra.mxu0 %v3176_v37 }
 0x127   :  { %v4083_v30 = vmax.f32 %v1507_v0, %v1511_v48  ;;  %2200 = vmatprep.mubr.bf16.mxu0 %v3180_v3  ;;  %v1515_v55 = vadd.f32 %v4034_v40, %v1401_v29 }
 0x128   :  { %v1548_v5 = vpop.f32.mrf.mxu1  ;;  %v1403_v10 = vpop.f32.mrf.mxu0 }
 0x129   :  { %v1517_v38 = vadd.f32 %v4040_v42, %v1403_v10 }
 0x12a   :  { %v1550_v58 = vpop.f32.mrf.mxu1  ;;  %v1405_v28 = vpop.f32.mrf.mxu0 }
 0x12b   :  { %v1519_v31 = vadd.f32 %v1518_v34, %v1405_v28 }
 0x12c   :  { %v1587_v32 = vpop.f32.mrf.mxu1  ;;  %v1407_v36 = vpop.f32.mrf.mxu0 }
 0x12d   :  { %v4088_v12 = vmax.f32 %v1515_v55, %v1519_v31  ;;  %v1521_v16 = vadd.f32 %v1520_v39, %v1407_v36 }
 0x12e   :  { %v1589_v41 = vpop.f32.mrf.mxu1  ;;  %v1411_v25 = vpop.f32.mrf.mxu0  ;;  %2201 = vmatmul.mubr.bf16.gmra.mxu0 %v3177_v26 }
 0x12f   :  { %v4093_v44 = vmax.f32 %v1517_v38, %v1521_v16  ;;  %2210 = vmatprep.mubr.bf16.mxu0 %v3180_v3  ;;  %v1525_v34 = vadd.f32 %v4048_v54, %v1411_v25 }
 0x130   :  { %v1591_v40 = vpop.f32.mrf.mxu1  ;;  %v1413_v46 = vpop.f32.mrf.mxu0 }
 0x131   :  { %v1527_v42 = vadd.f32 %v4054_v63, %v1413_v46 }
 0x132   :  { %v1593_v49 = vpop.f32.mrf.mxu1  ;;  %v1415_v50 = vpop.f32.mrf.mxu0 }
 0x133   :  { %v1529_v39 = vadd.f32 %v1528_v4, %v1415_v50 }
 0x134   :  { %v1597_v52 = vpop.f32.mrf.mxu1  ;;  %v1417_v59 = vpop.f32.mrf.mxu0 }
 0x135   :  { %v4098_v62 = vmax.f32 %v1525_v34, %v1529_v39  ;;  %v1531_v53 = vadd.f32 %v1530_v51, %v1417_v59 }
 0x136   :  { %v1599_v1 = vpop.f32.mrf.mxu1  ;;  %v1421_v47 = vpop.f32.mrf.mxu0  ;;  %2211 = vmatmul.mubr.bf16.gmra.mxu0 %v3178_v6 }
 0x137   :  { %v4103_v56 = vmax.f32 %v1527_v42, %v1531_v53  ;;  %2220 = vmatprep.mubr.bf16.mxu0 %v3180_v3  ;;  %v1535_v63 = vadd.f32 %v4062_v9, %v1421_v47 }
 0x138   :  { %v1601_v54 = vpop.f32.mrf.mxu1  ;;  %v1423_v4 = vpop.f32.mrf.mxu0 }
 0x139   :  { %v1537_v8 = vadd.f32 %v1536_v45, %v1423_v4 }
 0x13a   :  { %v1603_v57 = vpop.f32.mrf.mxu1  ;;  %v1425_v11 = vpop.f32.mrf.mxu0 }
 0x13b   :  { %v1539_v14 = vadd.f32 %v1538_v20, %v1425_v11 }
 0x13c   :  { %v1607_v51 = vpop.f32.mrf.mxu1  ;;  %v1427_v7 = vpop.f32.mrf.mxu0 }
 0x13d   :  { %v4107_v15 = vmax.f32 %v1535_v63, %v1539_v14  ;;  %v1541_v61 = vadd.f32 %v1540_v22, %v1427_v7 }
 0x13e   :  { %v1609_v21 = vpop.f32.mrf.mxu1  ;;  %v1431_v0 = vpop.f32.mrf.mxu0  ;;  %2221 = vmatmul.mubr.bf16.gmra.mxu0 %v3179_v23 }
 0x13f   :  { %v4112_v3 = vmax.f32 %v1537_v8, %v1541_v61  ;;  %v1545_v27 = vadd.f32 %v1544_v13, %v1431_v0 }
 0x140   :  { %v1611_v9 = vpop.f32.mrf.mxu1  ;;  %v1433_v24 = vpop.f32.mrf.mxu0 }
 0x141   :  { %v1547_v48 = vadd.f32 %v1546_v33, %v1433_v24 }
 0x142   :  { %v1613_v45 = vpop.f32.mrf.mxu1  ;;  %v1435_v20 = vpop.f32.mrf.mxu0 }
 0x143   :  { %v1549_v29 = vadd.f32 %v1548_v5, %v1435_v20 }
 0x144   :  { %v1617_v37 = vpop.f32.mrf.mxu1  ;;  %v1437_v55 = vpop.f32.mrf.mxu0 }
 0x145   :  { %v4114_v10 = vmax.f32 %v1545_v27, %v1549_v29  ;;  %v1551_v22 = vadd.f32 %v1550_v58, %v1437_v55 }
 0x146   :  { %v1619_v28 = vpop.f32.mrf.mxu1  ;;  %v1700_v31 = vpop.f32.mrf.mxu0 }
 0x147   :  { %v4116_v36 = vmax.f32 %v1547_v48, %v1551_v22  ;;  %v1701_v16 = vadd.f32 %v1700_v31, %v1587_v32 }
 0x148   :  { %v1621_v38 = vpop.f32.mrf.mxu1  ;;  %v1702_v25 = vpop.f32.mrf.mxu0 }
 0x149   :  { %v1703_v34 = vadd.f32 %v1702_v25, %v1589_v41 }
 0x14a   :  { %v1623_v26 = vpop.f32.mrf.mxu1  ;;  %v1704_v13 = vpop.f32.mrf.mxu0 }
 0x14b   :  { %v1705_v46 = vadd.f32 %v1704_v13, %v1591_v40 }
 0x14c   :  { %v1627_v42 = vpop.f32.mrf.mxu1  ;;  %v1706_v33 = vpop.f32.mrf.mxu0 }
 0x14d   :  { %v4118_v50 = vmax.f32 %v1701_v16, %v1705_v46  ;;  %v1707_v5 = vadd.f32 %v1706_v33, %v1593_v49 }
 0x14e   :  { %v1629_v39 = vpop.f32.mrf.mxu1  ;;  %v1710_v59 = vpop.f32.mrf.mxu0 }
 0x14f   :  { %v4120_v53 = vmax.f32 %v1703_v34, %v1707_v5  ;;  %v1711_v47 = vadd.f32 %v1710_v59, %v1597_v52 }
 0x150   :  { %v1631_v58 = vpop.f32.mrf.mxu1  ;;  %v1712_v6 = vpop.f32.mrf.mxu0 }
 0x151   :  { %v1713_v4 = vadd.f32 %v1712_v6, %v1599_v1 }
 0x152   :  { %v1633_v63 = vpop.f32.mrf.mxu1  ;;  %v1714_v32 = vpop.f32.mrf.mxu0 }
 0x153   :  { %v1715_v8 = vadd.f32 %v1714_v32, %v1601_v54 }
 0x154   :  { %v1637_v11 = vpop.f32.mrf.mxu1  ;;  %v1716_v41 = vpop.f32.mrf.mxu0 }
 0x155   :  { %v4122_v14 = vmax.f32 %v1711_v47, %v1715_v8  ;;  %v1717_v40 = vadd.f32 %v1716_v41, %v1603_v57 }
 0x156   :  { %v1639_v7 = vpop.f32.mrf.mxu1  ;;  %v1720_v61 = vpop.f32.mrf.mxu0 }
 0x157   :  { %v4124_v0 = vmax.f32 %v1713_v4, %v1717_v40  ;;  %v1721_v23 = vadd.f32 %v1720_v61, %v1607_v51 }
 0x158   :  { %v1641_v49 = vpop.f32.mrf.mxu1  ;;  %v1722_v27 = vpop.f32.mrf.mxu0 }
 0x159   :  { %v1723_v24 = vadd.f32 %v1722_v27, %v1609_v21 }
 0x15a   :  { %v1643_v48 = vpop.f32.mrf.mxu1  ;;  %v1724_v52 = vpop.f32.mrf.mxu0 }
 0x15b   :  { %v1725_v20 = vadd.f32 %v1724_v52, %v1611_v9 }
 0x15c   :  { %v1647_v29 = vpop.f32.mrf.mxu1  ;;  %v1726_v1 = vpop.f32.mrf.mxu0 }
 0x15d   :  { %v4126_v55 = vmax.f32 %v1721_v23, %v1725_v20  ;;  %v1727_v54 = vadd.f32 %v1726_v1, %v1613_v45 }
 0x15e   :  { %v1649_v22 = vpop.f32.mrf.mxu1  ;;  %v1730_v31 = vpop.f32.mrf.mxu0 }
 0x15f   :  { %v4128_v16 = vmax.f32 %v1723_v24, %v1727_v54  ;;  %v1731_v25 = vadd.f32 %v1730_v31, %v1617_v37 }
 0x160   :  { %v1651_v57 = vpop.f32.mrf.mxu1  ;;  %v1732_v34 = vpop.f32.mrf.mxu0 }
 0x161   :  { %v1733_v13 = vadd.f32 %v1732_v34, %v1619_v28 }
 0x162   :  { %v1653_v46 = vpop.f32.mrf.mxu1  ;;  %v1734_v51 = vpop.f32.mrf.mxu0 }
 0x163   :  { %v1735_v33 = vadd.f32 %v1734_v51, %v1621_v38 }
 0x164   :  { %v1657_v21 = vpop.f32.mrf.mxu1  ;;  %v1736_v5 = vpop.f32.mrf.mxu0 }
 0x165   :  { %v4130_v59 = vmax.f32 %v1731_v25, %v1735_v33  ;;  %v1737_v9 = vadd.f32 %v1736_v5, %v1623_v26 }
 0x166   :  { %v1659_v47 = vpop.f32.mrf.mxu1  ;;  %v1740_v6 = vpop.f32.mrf.mxu0 }
 0x167   :  { %v4132_v4 = vmax.f32 %v1733_v13, %v1737_v9  ;;  %v1741_v32 = vadd.f32 %v1740_v6, %v1627_v42 }
 0x168   :  { %v1661_v45 = vpop.f32.mrf.mxu1  ;;  %v1742_v8 = vpop.f32.mrf.mxu0 }
 0x169   :  { %4663 = vst [vmem:[#allocation2_spill] sm:$0xff] %v4132_v4  ;;  %v1743_v40 = vadd.f32 %v1742_v8, %v1629_v39 }
 0x16a   :  { %v1663_v41 = vpop.f32.mrf.mxu1  ;;  %v1744_v37 = vpop.f32.mrf.mxu0 }
 0x16b   :  { %v1745_v61 = vadd.f32 %v1744_v37, %v1631_v58 }
 0x16c   :  { %v1813_v28 = vpop.f32.mrf.mxu1  ;;  %v1746_v23 = vpop.f32.mrf.mxu0 }
 0x16d   :  { %v4134_v27 = vmax.f32 %v1741_v32, %v1745_v61  ;;  %v1747_v38 = vadd.f32 %v1746_v23, %v1633_v63 }
 0x16e   :  { %v1815_v24 = vpop.f32.mrf.mxu1  ;;  %v1750_v52 = vpop.f32.mrf.mxu0 }
 0x16f   :  { %4664 = vst [vmem:[#allocation3_spill] sm:$0xff] %v4134_v27  ;;  %v4136_v20 = vmax.f32 %v1743_v40, %v1747_v38  ;;  %v1751_v1 = vadd.f32 %v1750_v52, %v1637_v11  ;;  %v2232_v52 = vrot.slane %v4038_v35, 4 }
 0x170   :  { %v1817_v26 = vpop.f32.mrf.mxu1  ;;  %v1752_v54 = vpop.f32.mrf.mxu0 }
 0x171   :  { %4665 = vst [vmem:[#allocation4_spill] sm:$0xff] %v4136_v20  ;;  %v1753_v42 = vadd.f32 %v1752_v54, %v1639_v7 }
 0x172   :  { %v4138_v31 = vpop.f32.mrf.mxu1  ;;  %v1754_v25 = vpop.f32.mrf.mxu0 }
 0x173   :  { %v1755_v34 = vadd.f32 %v1754_v25, %v1641_v49  ;;  %v2288_v25 = vrot.slane %v4052_v60, 4 }
 0x174   :  { %v4140_v39 = vpop.f32.mrf.mxu1  ;;  %v1756_v58 = vpop.f32.mrf.mxu0 }
 0x175   :  { %v4142_v13 = vmax.f32 %v1751_v1, %v1755_v34  ;;  %v1757_v51 = vadd.f32 %v1756_v58, %v1643_v48 }
 0x176   :  { %v4144_v33 = vpop.f32.mrf.mxu1  ;;  %v1760_v63 = vpop.f32.mrf.mxu0 }
 0x177   :  { %4666 = vst [vmem:[#allocation5_spill] sm:$0xff] %v4142_v13  ;;  %v4146_v5 = vmax.f32 %v1753_v42, %v1757_v51  ;;  %v1761_v11 = vadd.f32 %v1760_v63, %v1647_v29 }
 0x178   :  { %v4148_v9 = vpop.f32.mrf.mxu1  ;;  %v1762_v6 = vpop.f32.mrf.mxu0 }
 0x179   :  { %4667 = vst [vmem:[#allocation6_spill] sm:$0xff] %v4146_v5  ;;  %v1763_v7 = vadd.f32 %v1762_v6, %v1649_v22 }
 0x17a   :  { %v4150_v32 = vpop.f32.mrf.mxu1  ;;  %v1764_v8 = vpop.f32.mrf.mxu0 }
 0x17b   :  { %v1765_v49 = vadd.f32 %v1764_v8, %v1651_v57  ;;  %v2239_v57 = vrot.slane %v4045_v43, 4 }
 0x17c   :  { %v4152_v40 = vpop.f32.mrf.mxu1  ;;  %v1766_v37 = vpop.f32.mrf.mxu0 }
 0x17d   :  { %v4154_v61 = vmax.f32 %v1761_v11, %v1765_v49  ;;  %v1767_v48 = vadd.f32 %v1766_v37, %v1653_v46  ;;  %v2233_v46 = vmax.f32 %v4038_v35, %v2232_v52  ;;  %v2295_v11 = vrot.slane %v4059_v2, 4 }
 0x17e   :  { %v4156_v23 = vpop.f32.mrf.mxu1  ;;  %v1770_v38 = vpop.f32.mrf.mxu0  ;;  %v2240_v49 = vmax.f32 %v4045_v43, %v2239_v57  ;;  %v2289_v37 = vmax.f32 %v4052_v60, %v2288_v25  ;;  %v2344_v52 = vrot.slane %v4066_v18, 4 }
 0x17f   :  { %4668 = vst [vmem:[#allocation7_spill] sm:$0xff] %v4154_v61  ;;  %v4159_v1 = vmax.f32 %v1763_v7, %v1767_v48  ;;  %v1771_v54 = vadd.f32 %v1770_v38, %v1657_v21 }
 0x180   :  { %v4161_v29 = vpop.f32.mrf.mxu1  ;;  %v1772_v42 = vpop.f32.mrf.mxu0 }
 0x181   :  { %4669 = vst [vmem:[#allocation8_spill] sm:$0xff] %v4159_v1  ;;  %v1773_v34 = vadd.f32 %v1772_v42, %v1659_v47  ;;  %v2234_v47 = vrot.slane %v2233_v46, 2  ;;  %v2351_v1 = vrot.slane %v4071_v19, 4 }
 0x182   :  { %v4163_v22 = vpop.f32.mrf.mxu1  ;;  %v1774_v58 = vpop.f32.mrf.mxu0 }
 0x183   :  { %v1775_v51 = vadd.f32 %v1774_v58, %v1661_v45  ;;  %v2296_v45 = vmax.f32 %v4059_v2, %v2295_v11  ;;  %v2235_v57 = vmax.f32 %v2233_v46, %v2234_v47 }
 0x184   :  { %v4168_v63 = vpop.f32.mrf.mxu1  ;;  %v1776_v6 = vpop.f32.mrf.mxu0 }
 0x185   :  { %v4171_v7 = vmax.f32 %v1771_v54, %v1775_v51  ;;  %v1777_v21 = vadd.f32 %v1776_v6, %v1663_v41  ;;  %v2241_v41 = vrot.slane %v2240_v49, 2  ;;  %v2290_v51 = vrot.slane %v2289_v37, 2 }
 0x186   :  { %v4173_v8 = vpop.f32.mrf.mxu1  ;;  %v1926_v48 = vpop.f32.mrf.mxu0 }
 0x187   :  { %4670 = vst [vmem:[#allocation9_spill] sm:$0xff] %v4171_v7  ;;  %v4177_v38 = vmax.f32 %v1773_v34, %v1777_v21  ;;  %v1927_v42 = vadd.f32 %v1926_v48, %v1813_v28  ;;  %v2297_v34 = vrot.slane %v2296_v45, 2  ;;  %v2345_v21 = vmax.f32 %v4066_v18, %v2344_v52 }
 0x188   :  { %v4179_v35 = vpop.f32.mrf.mxu1  ;;  %v1928_v54 = vpop.f32.mrf.mxu0  ;;  %v2242_v28 = vmax.f32 %v2240_v49, %v2241_v41  ;;  %v2291_v48 = vmax.f32 %v2289_v37, %v2290_v51  ;;  %v2400_v18 = vrot.slane %v4077_v17, 4  ;;  %v2352_v37 = vmax.f32 %v4071_v19, %v2351_v1 }
 0x189   :  { %4671 = vst [vmem:[#allocation10_spill] sm:$0xff] %v4177_v38  ;;  %v1929_v6 = vadd.f32 %v1928_v54, %v1815_v24  ;;  %v2236_v24 = vrot.slane %v2235_v57, 1  ;;  %v2298_v47 = vmax.f32 %v2296_v45, %v2297_v34 }
 0x18a   :  { %v4183_v58 = vpop.f32.mrf.mxu1  ;;  %v1930_v43 = vpop.f32.mrf.mxu0  ;;  %v2292_v49 = vrot.slane %v2291_v48, 1 }
 0x18b   :  { %v1931_v60 = vadd.f32 %v1930_v43, %v1817_v26  ;;  %v2346_v43 = vrot.slane %v2345_v21, 2 }
 0x18c   :  { %v4185_v25 = vpop.f32.mrf.mxu1  ;;  %v1932_v38 = vpop.f32.mrf.mxu0 }
 0x18d   :  { %v2259_v7 = vmax.f32 %v1927_v42, %v1931_v60  ;;  %v1933_v2 = vadd.f32 %v1932_v38, %v4138_v31  ;;  %v4203_v13 = vmax.f32 %v2345_v21, %v2346_v43  ;;  %v4214_v21 = vmax.f32 %v2291_v48, %v2292_v49 }
 0x18e   :  { %v4189_v11 = vpop.f32.mrf.mxu1  ;;  %v1936_v61 = vpop.f32.mrf.mxu0 }
 0x18f   :  { %v2260_v54 = vrot.slane %v2259_v7, 4  ;;  %v2266_v46 = vmax.f32 %v1929_v6, %v1933_v2  ;;  %v1937_v52 = vadd.f32 %v1936_v61, %v4140_v39  ;;  %v2243_v6 = vrot.slane %v2242_v28, 1 }
 0x190   :  { %v4192_v26 = vpop.f32.mrf.mxu1  ;;  %v1938_v42 = vpop.f32.mrf.mxu0  ;;  %v2401_v39 = vmax.f32 %v4077_v17, %v2400_v18 }
 0x191   :  { %v2261_v31 = vmax.f32 %v2259_v7, %v2260_v54  ;;  %v2267_v38 = vrot.slane %v2266_v46, 4  ;;  %v1939_v41 = vadd.f32 %v1938_v42, %v4144_v33  ;;  %v4206_v7 = vmax.f32 %v2235_v57, %v2236_v24 }
 0x192   :  { %v4196_v60 = vpop.f32.mrf.mxu1  ;;  %v1940_v51 = vpop.f32.mrf.mxu0  ;;  %v2299_v54 = vrot.slane %v2298_v47, 1 }
 0x193   :  { %v2262_v2 = vrot.slane %v2261_v31, 2  ;;  %v2268_v5 = vmax.f32 %v2266_v46, %v2267_v38  ;;  %v1941_v45 = vadd.f32 %v1940_v51, %v4148_v9  ;;  %v2353_v46 = vrot.slane %v2352_v37, 2 }
 0x194   :  { %v4201_v34 = vpop.f32.mrf.mxu1  ;;  %v1942_v61 = vpop.f32.mrf.mxu0  ;;  %v2407_v9 = vrot.slane %v4083_v30, 4  ;;  %v4212_v51 = vmax.f32 %v2242_v28, %v2243_v6  ;;  %v2456_v6 = vrot.slane %v4088_v12, 4 }
 0x195   :  { %v2263_v20 = vmax.f32 %v2261_v31, %v2262_v2  ;;  %v2269_v19 = vrot.slane %v2268_v5, 2  ;;  %v2315_v1 = vmax.f32 %v1937_v52, %v1941_v45  ;;  %v1943_v33 = vadd.f32 %v1942_v61, %v4150_v32 }
 0x196   :  { %v4209_v42 = vpop.f32.mrf.mxu1  ;;  %v1946_v38 = vpop.f32.mrf.mxu0  ;;  %4672 = vst [vmem:[#allocation11_spill] sm:$0xff] %v4212_v51  ;;  %v2348_v52 = vrot.slane %v4203_v13, 1  ;;  %v2402_v31 = vrot.slane %v2401_v39, 2  ;;  %v4220_v45 = vmax.f32 %v2298_v47, %v2299_v54 }
 0x197   :  { %v2264_v17 = vrot.slane %v2263_v20, 1  ;;  %v2270_v43 = vmax.f32 %v2268_v5, %v2269_v19  ;;  %v2316_v57 = vrot.slane %v2315_v1, 4  ;;  %v2322_v24 = vmax.f32 %v1939_v41, %v1943_v33 }
 0x198   :  { %v4216_v18 = vpop.f32.mrf.mxu1  ;;  %v1947_v32 = vadd.f32 %v1946_v38, %v4152_v40  ;;  %v1948_v2 = vpop.f32.mrf.mxu0  ;;  %v2354_v5 = vmax.f32 %v2352_v37, %v2353_v46  ;;  %v2408_v41 = vmax.f32 %v4083_v30, %v2407_v9  ;;  %v2403_v38 = vmax.f32 %v2401_v39, %v2402_v31 }
 0x199   :  { %v2271_v61 = vrot.slane %v2270_v43, 1  ;;  %v2317_v27 = vmax.f32 %v2315_v1, %v2316_v57  ;;  %v2323_v28 = vrot.slane %v2322_v24, 4  ;;  %v1949_v48 = vadd.f32 %v1948_v2, %v4156_v23 }
 0x19a   :  { %v4223_v49 = vpop.f32.mrf.mxu1  ;;  %v1950_v19 = vpop.f32.mrf.mxu0  ;;  %v4227_v33 = vmax.f32 %v2263_v20, %v2264_v17  ;;  %v2463_v23 = vrot.slane %v4093_v44, 4  ;;  %v2782_v20 = vld [vmem:[%s4631_s2 + $0x38] sm:$0xff]  ;;  %v2355_v39 = vrot.slane %v2354_v5, 1  ;;  %v2457_v31 = vmax.f32 %v4088_v12, %v2456_v6 }
 0x19b   :  { %v2318_v4 = vrot.slane %v2317_v27, 2  ;;  %v2324_v40 = vmax.f32 %v2322_v24, %v2323_v28  ;;  %v1951_v47 = vadd.f32 %v1950_v19, %v4161_v29  ;;  %v4232_v1 = vmax.f32 %v2270_v43, %v2271_v61 }
 0x19c   :  { %v4230_v54 = vpop.f32.mrf.mxu1  ;;  %v1952_v57 = vpop.f32.mrf.mxu0  ;;  %v4642_v43 = vmov 0.0   ;;  %v2409_v24 = vrot.slane %v2408_v41, 2 }
 0x19d   :  { %4673 = vst [vmem:[#allocation12_spill] sm:$0xff] %v4232_v1  ;;  %v2319_v37 = vmax.f32 %v2317_v27, %v2318_v4  ;;  %v2325_v46 = vrot.slane %v2324_v40, 2  ;;  %v2371_v9 = vmax.f32 %v1947_v32, %v1951_v47  ;;  %v1953_v29 = vadd.f32 %v1952_v57, %v4163_v22  ;;  %3116 = vmatprep.subr.mxu1 %v4642_v43 }
 0x19e   :  { %v4241_v17 = vpop.f32.mrf.mxu1  ;;  %v1956_v2 = vpop.f32.mrf.mxu0  ;;  %3117 = vmatpush3.msra.mxu1 %v2782_v20  ;;  %v4251_v22 = vmax.f32 %v4203_v13, %v2348_v52  ;;  %v2404_v47 = vrot.slane %v2403_v38, 1  ;;  %v2464_v57 = vmax.f32 %v4093_v44, %v2463_v23 }
 0x19f   :  { %v2320_v28 = vrot.slane %v2319_v37, 1  ;;  %v2326_v4 = vmax.f32 %v2324_v40, %v2325_v46  ;;  %v2372_v27 = vrot.slane %v2371_v9, 4  ;;  %v2378_v32 = vmax.f32 %v1949_v48, %v1953_v29  ;;  %3118 = vmatprep.subr.mxu1 %v4642_v43 }
 0x1a0   :  { %v4247_v19 = vpop.f32.mrf.mxu1  ;;  %4674 = vst [vmem:[#allocation13_spill] sm:$0xff] %v4251_v22  ;;  %v1957_v12 = vadd.f32 %v1956_v2, %v4168_v63  ;;  %v1958_v6 = vpop.f32.mrf.mxu0  ;;  %v4258_v48 = vmax.f32 %v2354_v5, %v2355_v39  ;;  %v2410_v29 = vmax.f32 %v2408_v41, %v2409_v24  ;;  %v2458_v43 = vrot.slane %v2457_v31, 2 }
 0x1a1   :  { %v2327_v30 = vrot.slane %v2326_v4, 1  ;;  %v2373_v61 = vmax.f32 %v2371_v9, %v2372_v27  ;;  %v2379_v20 = vrot.slane %v2378_v32, 4  ;;  %v1959_v40 = vadd.f32 %v1958_v6, %v4173_v8 }
 0x1a2   :  { %v4256_v46 = vpop.f32.mrf.mxu1  ;;  %v1960_v1 = vpop.f32.mrf.mxu0  ;;  %v4260_v13 = vmax.f32 %v2319_v37, %v2320_v28  ;;  %v4267_v9 = vmax.f32 %v2403_v38, %v2404_v47  ;;  %v2465_v8 = vrot.slane %v2464_v57, 2  ;;  %v2512_v2 = vrot.slane %v4098_v62, 4 }
 0x1a3   :  { %v2374_v52 = vrot.slane %v2373_v61, 2  ;;  %v2380_v51 = vmax.f32 %v2378_v32, %v2379_v20  ;;  %v1961_v44 = vadd.f32 %v1960_v1, %v4179_v35  ;;  %v4265_v23 = vmax.f32 %v2326_v4, %v2327_v30 }
 0x1a4   :  { %4675 = vst [vmem:[#allocation14_spill] sm:$0xff] %v4260_v13  ;;  %v4263_v63 = vpop.f32.mrf.mxu1  ;;  %v1962_v5 = vpop.f32.mrf.mxu0  ;;  %v2411_v35 = vrot.slane %v2410_v29, 1  ;;  %v2459_v1 = vmax.f32 %v2457_v31, %v2458_v43  ;;  %v2519_v30 = vrot.slane %v4103_v56, 4 }
 0x1a5   :  { %4676 = vst [vmem:[#allocation15_spill] sm:$0xff] %v4265_v23  ;;  %v2375_v39 = vmax.f32 %v2373_v61, %v2374_v52  ;;  %v2381_v37 = vrot.slane %v2380_v51, 2  ;;  %v2427_v24 = vmax.f32 %v1957_v12, %v1961_v44  ;;  %v1963_v28 = vadd.f32 %v1962_v5, %v4183_v58 }
 0x1a6   :  { %v4273_v27 = vpop.f32.mrf.mxu1  ;;  %v1966_v38 = vpop.f32.mrf.mxu0  ;;  %v2466_v61 = vmax.f32 %v2464_v57, %v2465_v8  ;;  %v2513_v12 = vmax.f32 %v4098_v62, %v2512_v2  ;;  %v2568_v58 = vrot.slane %v4107_v15, 4 }
 0x1a7   :  { %v2376_v32 = vrot.slane %v2375_v39, 1  ;;  %v2382_v47 = vmax.f32 %v2380_v51, %v2381_v37  ;;  %v2428_v6 = vrot.slane %v2427_v24, 4  ;;  %v2434_v20 = vmax.f32 %v1959_v40, %v1963_v28 }
 0x1a8   :  { %v4278_v41 = vpop.f32.mrf.mxu1  ;;  %v1967_v52 = vadd.f32 %v1966_v38, %v4185_v25  ;;  %v1968_v43 = vpop.f32.mrf.mxu0  ;;  %v4287_v51 = vmax.f32 %v2410_v29, %v2411_v35  ;;  %v2460_v40 = vrot.slane %v2459_v1, 1  ;;  %v2520_v37 = vmax.f32 %v4103_v56, %v2519_v30 }
 0x1a9   :  { %v4283_v31 = vmax.f32 %v2375_v39, %v2376_v32  ;;  %v2383_v44 = vrot.slane %v2382_v47, 1  ;;  %v2429_v5 = vmax.f32 %v2427_v24, %v2428_v6  ;;  %v2435_v13 = vrot.slane %v2434_v20, 4 }
 0x1aa   :  { %v4285_v4 = vpop.f32.mrf.mxu1  ;;  %v1969_v57 = vadd.f32 %v1968_v43, %v4189_v11  ;;  %v1970_v62 = vpop.f32.mrf.mxu0  ;;  %v2467_v24 = vrot.slane %v2466_v61, 1  ;;  %v2514_v38 = vrot.slane %v2513_v12, 2  ;;  %v2569_v32 = vmax.f32 %v4107_v15, %v2568_v58 }
 0x1ab   :  { %4677 = vst [vmem:[#allocation16_spill] sm:$0xff] %v4283_v31  ;;  %v4291_v8 = vmax.f32 %v2382_v47, %v2383_v44  ;;  %v2430_v2 = vrot.slane %v2429_v5, 2  ;;  %v2436_v25 = vmax.f32 %v2434_v20, %v2435_v13  ;;  %v1971_v39 = vadd.f32 %v1970_v62, %v4192_v26 }
 0x1ac   :  { %v4294_v28 = vpop.f32.mrf.mxu1  ;;  %v1972_v29 = vpop.f32.mrf.mxu0  ;;  %v4302_v13 = vmax.f32 %v2459_v1, %v2460_v40  ;;  %v2521_v26 = vrot.slane %v2520_v37, 2  ;;  %v2575_v20 = vrot.slane %v4112_v3, 4 }
 0x1ad   :  { %v2431_v56 = vmax.f32 %v2429_v5, %v2430_v2  ;;  %v2437_v30 = vrot.slane %v2436_v25, 2  ;;  %v2483_v11 = vmax.f32 %v1967_v52, %v1971_v39  ;;  %v1973_v47 = vadd.f32 %v1972_v29, %v4196_v60 }
 0x1ae   :  { %v4300_v6 = vpop.f32.mrf.mxu1  ;;  %v1976_v43 = vpop.f32.mrf.mxu0  ;;  %v4309_v52 = vmax.f32 %v2466_v61, %v2467_v24  ;;  %v2515_v60 = vmax.f32 %v2513_v12, %v2514_v38  ;;  %v2570_v2 = vrot.slane %v2569_v32, 2  ;;  %v2522_v15 = vmax.f32 %v2520_v37, %v2521_v26 }
 0x1af   :  { %v2432_v58 = vrot.slane %v2431_v56, 1  ;;  %v2438_v44 = vmax.f32 %v2436_v25, %v2437_v30  ;;  %v2484_v62 = vrot.slane %v2483_v11, 4  ;;  %v2490_v35 = vmax.f32 %v1969_v57, %v1973_v47 }
 0x1b0   :  { %v4307_v5 = vpop.f32.mrf.mxu1  ;;  %v1977_v1 = vadd.f32 %v1976_v43, %v4201_v34  ;;  %v1978_v40 = vpop.f32.mrf.mxu0  ;;  %v2576_v25 = vmax.f32 %v4112_v3, %v2575_v20  ;;  %v2624_v57 = vrot.slane %v4114_v10, 4  ;;  %v2571_v47 = vmax.f32 %v2569_v32, %v2570_v2 }
 0x1b1   :  { %v4312_v39 = vmax.f32 %v2431_v56, %v2432_v58  ;;  %v2439_v29 = vrot.slane %v2438_v44, 1  ;;  %v2485_v31 = vmax.f32 %v2483_v11, %v2484_v62  ;;  %v2491_v22 = vrot.slane %v2490_v35, 4 }
 0x1b2   :  { %v4314_v23 = vpop.f32.mrf.mxu1  ;;  %v1979_v61 = vadd.f32 %v1978_v40, %v4209_v42  ;;  %v1980_v24 = vpop.f32.mrf.mxu0  ;;  %v2516_v11 = vrot.slane %v2515_v60, 1  ;;  %v2631_v43 = vrot.slane %v4116_v36, 4 }
 0x1b3   :  { %4678 = vst [vmem:[#allocation17_spill] sm:$0xff] %v4312_v39  ;;  %v4319_v12 = vmax.f32 %v2438_v44, %v2439_v29  ;;  %v2486_v38 = vrot.slane %v2485_v31, 2  ;;  %v2492_v34 = vmax.f32 %v2490_v35, %v2491_v22  ;;  %v1981_v56 = vadd.f32 %v1980_v24, %v4216_v18 }
 0x1b4   :  { %v4322_v30 = vpop.f32.mrf.mxu1  ;;  %v1982_v37 = vpop.f32.mrf.mxu0  ;;  %v2523_v22 = vrot.slane %v2522_v15, 1  ;;  %v2577_v35 = vrot.slane %v2576_v25, 2  ;;  %v2625_v18 = vmax.f32 %v4114_v10, %v2624_v57 }
 0x1b5   :  { %4679 = vst [vmem:[#allocation18_spill] sm:$0xff] %v4319_v12  ;;  %v2487_v26 = vmax.f32 %v2485_v31, %v2486_v38  ;;  %v2493_v20 = vrot.slane %v2492_v34, 2  ;;  %v2539_v42 = vmax.f32 %v1977_v1, %v1981_v56  ;;  %v1983_v58 = vadd.f32 %v1982_v37, %v4223_v49 }
 0x1b6   :  { %v4328_v44 = vpop.f32.mrf.mxu1  ;;  %v1986_v62 = vpop.f32.mrf.mxu0  ;;  %v4335_v31 = vmax.f32 %v2515_v60, %v2516_v11  ;;  %v2572_v1 = vrot.slane %v2571_v47, 1  ;;  %v2632_v49 = vmax.f32 %v4116_v36, %v2631_v43 }
 0x1b7   :  { %v2488_v2 = vrot.slane %v2487_v26, 1  ;;  %v2494_v40 = vmax.f32 %v2492_v34, %v2493_v20  ;;  %v2540_v29 = vrot.slane %v2539_v42, 4  ;;  %v2546_v24 = vmax.f32 %v1979_v61, %v1983_v58 }
 0x1b8   :  { %v4333_v3 = vpop.f32.mrf.mxu1  ;;  %4680 = vst [vmem:[#allocation19_spill] sm:$0xff] %v4335_v31  ;;  %v1987_v38 = vadd.f32 %v1986_v62, %v4230_v54  ;;  %v1988_v56 = vpop.f32.mrf.mxu0  ;;  %v4343_v34 = vmax.f32 %v2522_v15, %v2523_v22  ;;  %v2578_v61 = vmax.f32 %v2576_v25, %v2577_v35  ;;  %v2626_v20 = vrot.slane %v2625_v18, 2 }
 0x1b9   :  { %v4339_v37 = vmax.f32 %v2487_v26, %v2488_v2  ;;  %v2495_v10 = vrot.slane %v2494_v40, 1  ;;  %v2541_v57 = vmax.f32 %v2539_v42, %v2540_v29  ;;  %v2547_v39 = vrot.slane %v2546_v24, 4 }
 0x1ba   :  { %v4341_v32 = vpop.f32.mrf.mxu1  ;;  %v1989_v60 = vadd.f32 %v1988_v56, %v4241_v17  ;;  %v1990_v11 = vpop.f32.mrf.mxu0  ;;  %v4351_v62 = vmax.f32 %v2571_v47, %v2572_v1  ;;  %v2633_v42 = vrot.slane %v2632_v49, 2  ;;  %v2246_v2 = vrot.slane %v4118_v50, 4 }
 0x1bb   :  { %4681 = vst [vmem:[#allocation20_spill] sm:$0xff] %v4339_v37  ;;  %v4346_v58 = vmax.f32 %v2494_v40, %v2495_v10  ;;  %v2542_v36 = vrot.slane %v2541_v57, 2  ;;  %v2548_v43 = vmax.f32 %v2546_v24, %v2547_v39  ;;  %v1991_v54 = vadd.f32 %v1990_v11, %v4247_v19 }
 0x1bc   :  { %v4349_v26 = vpop.f32.mrf.mxu1  ;;  %4682 = vst [vmem:[#allocation21_spill] sm:$0xff] %v4351_v62  ;;  %v1992_v15 = vpop.f32.mrf.mxu0  ;;  %v2579_v39 = vrot.slane %v2578_v61, 1  ;;  %v2627_v19 = vmax.f32 %v2625_v18, %v2626_v20  ;;  %v2253_v24 = vrot.slane %v4120_v53, 4 }
 0x1bd   :  { %v2543_v22 = vmax.f32 %v2541_v57, %v2542_v36  ;;  %v2549_v17 = vrot.slane %v2548_v43, 2  ;;  %v2595_v35 = vmax.f32 %v1987_v38, %v1991_v54  ;;  %v1993_v40 = vadd.f32 %v1992_v15, %v4256_v46 }
 0x1be   :  { %v4357_v29 = vpop.f32.mrf.mxu1  ;;  %v1996_v47 = vpop.f32.mrf.mxu0  ;;  %v2634_v57 = vmax.f32 %v2632_v49, %v2633_v42  ;;  %v2247_v38 = vmax.f32 %v4118_v50, %v2246_v2  ;;  %v2302_v46 = vrot.slane %v4122_v14, 4 }
 0x1bf   :  { %v2544_v56 = vrot.slane %v2543_v22, 1  ;;  %v2550_v10 = vmax.f32 %v2548_v43, %v2549_v17  ;;  %v2596_v11 = vrot.slane %v2595_v35, 4  ;;  %v2602_v12 = vmax.f32 %v1989_v60, %v1993_v40 }
 0x1c0   :  { %v4362_v25 = vpop.f32.mrf.mxu1  ;;  %v1997_v36 = vadd.f32 %v1996_v47, %v4263_v63  ;;  %v1998_v18 = vpop.f32.mrf.mxu0  ;;  %v4371_v43 = vmax.f32 %v2578_v61, %v2579_v39  ;;  %v2628_v60 = vrot.slane %v2627_v19, 1  ;;  %v2254_v17 = vmax.f32 %v4120_v53, %v2253_v24 }
 0x1c1   :  { %v4367_v20 = vmax.f32 %v2543_v22, %v2544_v56  ;;  %v2551_v54 = vrot.slane %v2550_v10, 1  ;;  %v2597_v15 = vmax.f32 %v2595_v35, %v2596_v11  ;;  %v2603_v37 = vrot.slane %v2602_v12, 4 }
 0x1c2   :  { %v4369_v1 = vpop.f32.mrf.mxu1  ;;  %4684 = vst [vmem:[#allocation23_spill] sm:$0xff] %v4371_v43  ;;  %v1999_v49 = vadd.f32 %v1998_v18, %v4273_v27  ;;  %v2000_v50 = vpop.f32.mrf.mxu0  ;;  %v2635_v35 = vrot.slane %v2634_v57, 1  ;;  %v2248_v47 = vrot.slane %v2247_v38, 2  ;;  %v2303_v56 = vmax.f32 %v4122_v14, %v2302_v46 }
 0x1c3   :  { %4683 = vst [vmem:[#allocation22_spill] sm:$0xff] %v4367_v20  ;;  %v4375_v42 = vmax.f32 %v2550_v10, %v2551_v54  ;;  %v2598_v2 = vrot.slane %v2597_v15, 2  ;;  %v2604_v63 = vmax.f32 %v2602_v12, %v2603_v37  ;;  %v2001_v22 = vadd.f32 %v2000_v50, %v4278_v41 }
 0x1c4   :  { %v4378_v40 = vpop.f32.mrf.mxu1  ;;  %v2002_v61 = vpop.f32.mrf.mxu0  ;;  %v4386_v12 = vmax.f32 %v2627_v19, %v2628_v60  ;;  %v2255_v41 = vrot.slane %v2254_v17, 2  ;;  %v2309_v37 = vrot.slane %v4124_v0, 4  ;;  %v2358_v19 = vrot.slane %v4126_v55, 4 }
 0x1c5   :  { %4685 = vst [vmem:[#allocation24_spill] sm:$0xff] %v4375_v42  ;;  %v2599_v53 = vmax.f32 %v2597_v15, %v2598_v2  ;;  %v2605_v24 = vrot.slane %v2604_v63, 2  ;;  %v2651_v27 = vmax.f32 %v1997_v36, %v2001_v22  ;;  %v2003_v10 = vadd.f32 %v2002_v61, %v4285_v4 }
 0x1c6   :  { %v4384_v11 = vpop.f32.mrf.mxu1  ;;  %v2152_v18 = vpop.f32.mrf.mxu0  ;;  %v4393_v36 = vmax.f32 %v2634_v57, %v2635_v35  ;;  %v4395_v4 = vmax.f32 %v2247_v38, %v2248_v47  ;;  %v2304_v2 = vrot.slane %v2303_v56, 2  ;;  %v2365_v57 = vrot.slane %v4128_v16, 4 }
 0x1c7   :  { %v2600_v46 = vrot.slane %v2599_v53, 1  ;;  %v2606_v54 = vmax.f32 %v2604_v63, %v2605_v24  ;;  %v2652_v50 = vrot.slane %v2651_v27, 4  ;;  %v2658_v39 = vmax.f32 %v1999_v49, %v2003_v10 }
 0x1c8   :  { %v4391_v15 = vpop.f32.mrf.mxu1  ;;  %4686 = vst [vmem:[#allocation25_spill] sm:$0xff] %v4393_v36  ;;  %v2154_v60 = vpop.f32.mrf.mxu0  ;;  %v4402_v63 = vmax.f32 %v2254_v17, %v2255_v41  ;;  %v2310_v49 = vmax.f32 %v4124_v0, %v2309_v37  ;;  %v2153_v38 = vadd.f32 %v2152_v18, %v4294_v28  ;;  %v2359_v17 = vmax.f32 %v4126_v55, %v2358_v19 }
 0x1c9   :  { %v4398_v22 = vmax.f32 %v2599_v53, %v2600_v46  ;;  %v2607_v61 = vrot.slane %v2606_v54, 1  ;;  %v2653_v20 = vmax.f32 %v2651_v27, %v2652_v50  ;;  %v2659_v31 = vrot.slane %v2658_v39, 4 }
 0x1ca   :  { %v4400_v14 = vpop.f32.mrf.mxu1  ;;  %v2156_v35 = vpop.f32.mrf.mxu0  ;;  %v4412_v27 = vmax.f32 %v2303_v56, %v2304_v2  ;;  %v2155_v41 = vadd.f32 %v2154_v60, %v4300_v6  ;;  %v2414_v56 = vrot.slane %v4130_v59, 4 }
 0x1cb   :  { %4687 = vst [vmem:[#allocation26_spill] sm:$0xff] %v4398_v22  ;;  %v4407_v47 = vmax.f32 %v2606_v54, %v2607_v61  ;;  %v2654_v24 = vrot.slane %v2653_v20, 2  ;;  %v2660_v10 = vmax.f32 %v2658_v39, %v2659_v31  ;;  %v2157_v53 = vadd.f32 %v2156_v35, %v4307_v5 }
 0x1cc   :  { %v4410_v46 = vpop.f32.mrf.mxu1  ;;  %v2158_v0 = vpop.f32.mrf.mxu0  ;;  %v2311_v5 = vrot.slane %v2310_v49, 2  ;;  %v2366_v39 = vmax.f32 %v4128_v16, %v2365_v57  ;;  %v2360_v35 = vrot.slane %v2359_v17, 2 }
 0x1cd   :  { %4688 = vst [vmem:[#allocation27_spill] sm:$0xff] %v4407_v47  ;;  %v2655_v28 = vmax.f32 %v2653_v20, %v2654_v24  ;;  %v2661_v18 = vrot.slane %v2660_v10, 2  ;;  %v2273_v54 = vmax.f32 %v2153_v38, %v2157_v53  ;;  %v2159_v50 = vadd.f32 %v2158_v0, %v4314_v23 }
 0x1ce   :  { %v4419_v31 = vpop.f32.mrf.mxu1  ;;  %v2162_v2 = vpop.f32.mrf.mxu0  ;;  %v2250_v20 = vrot.slane %v4395_v4, 1  ;;  %v2257_v38 = vrot.slane %v4402_v63, 1  ;;  %v2306_v23 = vrot.slane %v4412_v27, 1  ;;  %v4432_v55 = vmax.f32 %v2310_v49, %v2311_v5 }
 0x1cf   :  { %v2656_v6 = vrot.slane %v2655_v28, 1  ;;  %v2662_v19 = vmax.f32 %v2660_v10, %v2661_v18  ;;  %v2274_v60 = vrot.slane %v2273_v54, 4  ;;  %v2280_v61 = vmax.f32 %v2155_v41, %v2159_v50 }
 0x1d0   :  { %v2164_v24 = vpop.f32.mrf.mxu0  ;;  %v4428_v53 = vpop.f32.mrf.mxu1  ;;  %v2367_v10 = vrot.slane %v2366_v39, 2  ;;  %v2415_v41 = vmax.f32 %v4130_v59, %v2414_v56  ;;  %v2163_v18 = vadd.f32 %v2162_v2, %v4322_v30  ;;  %v2361_v42 = vmax.f32 %v2359_v17, %v2360_v35 }
 0x1d1   :  { %v4430_v16 = vmax.f32 %v2655_v28, %v2656_v6  ;;  %v2663_v57 = vrot.slane %v2662_v19, 1  ;;  %v2275_v0 = vmax.f32 %v2273_v54, %v2274_v60  ;;  %v2281_v37 = vrot.slane %v2280_v61, 4  ;;  %v4691_v28 = vld [vmem:[#allocation2_spill] sm:$0xff] }
 0x1d2   :  { %v2166_v50 = vpop.f32.mrf.mxu0  ;;  %v2421_v6 = vrot.slane %v4691_v28, 4  ;;  %v2165_v54 = vadd.f32 %v2164_v24, %v4328_v44  ;;  %v4441_v49 = vpop.f32.mrf.mxu1 }
 0x1d3   :  { %4689 = vst [vmem:[#allocation28_spill] sm:$0xff] %v4430_v16  ;;  %v4436_v47 = vmax.f32 %v2662_v19, %v2663_v57  ;;  %v2276_v43 = vrot.slane %v2275_v0, 2  ;;  %v2282_v22 = vmax.f32 %v2280_v61, %v2281_v37  ;;  %v2167_v62 = vadd.f32 %v2166_v50, %v4333_v3 }
 0x1d4   :  { %v2168_v60 = vpop.f32.mrf.mxu0  ;;  %v2368_v19 = vmax.f32 %v2366_v39, %v2367_v10  ;;  %v2416_v37 = vrot.slane %v2415_v41, 2  ;;  %v2251_v3 = vmax.f32 %v4395_v4, %v2250_v20  ;;  %v4455_v10 = vpop.f32.mrf.mxu1  ;;  %v4458_v4 = vmax.f32 %v4412_v27, %v2306_v23  ;;  %v4693_v23 = vld [vmem:[#allocation3_spill] sm:$0xff] }
 0x1d5   :  { %4690 = vst [vmem:[#allocation29_spill] sm:$0xff] %v4436_v47  ;;  %v2277_v5 = vmax.f32 %v2275_v0, %v2276_v43  ;;  %v2283_v30 = vrot.slane %v2282_v22, 2  ;;  %v2329_v56 = vmax.f32 %v2163_v18, %v2167_v62  ;;  %v2169_v2 = vadd.f32 %v2168_v60, %v4341_v32  ;;  %v2781_v43 = vld [vmem:[%s4631_s2 + $0x30] sm:$0xff] }
 0x1d6   :  { %v2172_v61 = vpop.f32.mrf.mxu0  ;;  %v2313_v62 = vrot.slane %v4432_v55, 1  ;;  %v2422_v32 = vmax.f32 %v4691_v28, %v2421_v6  ;;  %v2258_v0 = vmax.f32 %v4402_v63, %v2257_v38  ;;  %3119 = vmatpush3.msra.mxu1 %v2781_v43  ;;  %v2369_v60 = vrot.slane %v2368_v19, 1  ;;  %v4465_v36 = vpop.f32.mrf.mxu1 }
 0x1d7   :  { %v2278_v44 = vrot.slane %v2277_v5, 1  ;;  %v2284_v35 = vmax.f32 %v2282_v22, %v2283_v30  ;;  %v2330_v24 = vrot.slane %v2329_v56, 4  ;;  %v2336_v57 = vmax.f32 %v2165_v54, %v2169_v2 }
 0x1d8   :  { %v2174_v39 = vpop.f32.mrf.mxu0  ;;  %v2362_v22 = vrot.slane %v2361_v42, 1  ;;  %v4692_v54 = vmov 0.0   ;;  %v2417_v30 = vmax.f32 %v2415_v41, %v2416_v37  ;;  %v2173_v2 = vadd.f32 %v2172_v61, %v4349_v26 }
 0x1d9   :  { %v2285_v20 = vrot.slane %v2284_v35, 1  ;;  %v2331_v18 = vmax.f32 %v2329_v56, %v2330_v24  ;;  %v2337_v50 = vrot.slane %v2336_v57, 4  ;;  %3120 = vmatprep.subr.mxu1 %v4692_v54  ;;  %v2279_v6 = vmax.f32 %v2277_v5, %v2278_v44  ;;  %3132 = vmatprep.mubr.msk.f32.mxu1 %vm3183_vm0, %v4692_v54 }
 0x1da   :  { %v2176_v28 = vpop.f32.mrf.mxu0  ;;  %v2423_v27 = vrot.slane %v2422_v32, 2  ;;  %v2470_v43 = vrot.slane %v4693_v23, 4  ;;  %v2175_v47 = vadd.f32 %v2174_v39, %v4357_v29  ;;  %v4468_v5 = vmax.f32 %v2361_v42, %v2362_v22  ;;  %v4695_v42 = vld [vmem:[#allocation11_spill] sm:$0xff]  ;;  %v4696_v22 = vld [vmem:[#allocation12_spill] sm:$0xff] }
 0x1db   :  { %v2332_v17 = vrot.slane %v2331_v18, 2  ;;  %v2338_v63 = vmax.f32 %v2336_v57, %v2337_v50  ;;  %v2177_v38 = vadd.f32 %v2176_v28, %v4362_v25  ;;  %v2286_v59 = vmax.f32 %v2284_v35, %v2285_v20  ;;  %v4698_v28 = vld [vmem:[#allocation4_spill] sm:$0xff] }
 0x1dc   :  { %v2178_v56 = vpop.f32.mrf.mxu0  ;;  %v2681_v24 = vmax.f32 %v2251_v3, %v2279_v6  ;;  %v4694_v25 = vmax.f32 %v4206_v7, %v4227_v33  ;;  %v2314_v57 = vmax.f32 %v4432_v55, %v2313_v62  ;;  %v4474_v50 = vmax.f32 %v2368_v19, %v2369_v60 }
 0x1dd   :  { %v2333_v16 = vmax.f32 %v2331_v18, %v2332_v17  ;;  %v2339_v41 = vrot.slane %v2338_v63, 2  ;;  %v2385_v37 = vmax.f32 %v2173_v2, %v2177_v38  ;;  %v2179_v26 = vadd.f32 %v2178_v56, %v4369_v1 }
 0x1de   :  { %v2182_v61 = vpop.f32.mrf.mxu0  ;;  %v2682_v44 = vmax.f32 %v2258_v0, %v2286_v59  ;;  %v2711_v35 = vmax.f32 %v4694_v25, %v2681_v24  ;;  %v2418_v17 = vrot.slane %v2417_v30, 1  ;;  %v2471_v18 = vmax.f32 %v4693_v23, %v2470_v43  ;;  %v4480_v0 = vpop.f32.mrf.mxu1  ;;  %v4699_v24 = vld [vmem:[#allocation5_spill] sm:$0xff] }
 0x1df   :  { %v2334_v29 = vrot.slane %v2333_v16, 1  ;;  %v2340_v39 = vmax.f32 %v2338_v63, %v2339_v41  ;;  %v2386_v3 = vrot.slane %v2385_v37, 4  ;;  %v2392_v20 = vmax.f32 %v2175_v47, %v2179_v26 }
 0x1e0   :  { %v2184_v1 = vpop.f32.mrf.mxu0  ;;  %v4697_v2 = vmax.f32 %v4695_v42, %v4696_v22  ;;  %v4482_v7 = vmax.f32 %v2422_v32, %v2423_v27  ;;  %v2477_v6 = vrot.slane %v4698_v28, 4  ;;  %v2183_v47 = vadd.f32 %v2182_v61, %v4378_v40  ;;  %v2780_v32 = vld [vmem:[%s4631_s2 + $0x28] sm:$0xff]  ;;  %v4497_v26 = vpop.f32.mrf.mxu1 }
 0x1e1   :  { %v2341_v33 = vrot.slane %v2340_v39, 1  ;;  %v2387_v55 = vmax.f32 %v2385_v37, %v2386_v3  ;;  %v2393_v62 = vrot.slane %v2392_v20, 4  ;;  %v2335_v63 = vmax.f32 %v2333_v16, %v2334_v29  ;;  %3121 = vmatpush3.msra.mxu1 %v2780_v32  ;;  %v4700_v3 = vld [vmem:[#allocation14_spill] sm:$0xff] }
 0x1e2   :  { %v2712_v59 = vmax.f32 %v4697_v2, %v2682_v44  ;;  %v2186_v19 = vpop.f32.mrf.mxu0  ;;  %v2472_v27 = vrot.slane %v2471_v18, 2  ;;  %v2526_v41 = vrot.slane %v4699_v24, 4  ;;  %v2185_v37 = vadd.f32 %v2184_v1, %v4384_v11  ;;  %3122 = vmatprep.subr.mxu1 %v4692_v54 }
 0x1e3   :  { %v2388_v38 = vrot.slane %v2387_v55, 2  ;;  %v2394_v23 = vmax.f32 %v2392_v20, %v2393_v62  ;;  %v2187_v43 = vadd.f32 %v2186_v19, %v4391_v15  ;;  %v2342_v56 = vmax.f32 %v2340_v39, %v2341_v33 }
 0x1e4   :  { %v4486_v60 = vmax.f32 %v2711_v35, %v2712_v59  ;;  %v2188_v40 = vpop.f32.mrf.mxu0  ;;  %v2685_v16 = vmax.f32 %v4458_v4, %v2335_v63  ;;  %v4501_v35 = vmax.f32 %v2417_v30, %v2418_v17  ;;  %v2478_v11 = vmax.f32 %v4698_v28, %v2477_v6  ;;  %v4702_v30 = vld [vmem:[#allocation15_spill] sm:$0xff]  ;;  %v4512_v28 = vpop.f32.mrf.mxu1  ;;  %v4704_v63 = vld [vmem:[#allocation6_spill] sm:$0xff] }
 0x1e5   :  { %v2389_v15 = vmax.f32 %v2387_v55, %v2388_v38  ;;  %v2395_v61 = vrot.slane %v2394_v23, 2  ;;  %v2441_v44 = vmax.f32 %v2183_v47, %v2187_v43  ;;  %v2189_v25 = vadd.f32 %v2188_v40, %v4400_v14 }
 0x1e6   :  { %2743 = vrot.lane.b32.xlu1 %v4486_v60, %s3182_s7  ;;  %v2192_v29 = vpop.f32.mrf.mxu0  ;;  %v2686_v39 = vmax.f32 %v2314_v57, %v2342_v56  ;;  %v4701_v20 = vmax.f32 %v4214_v21, %v4700_v3  ;;  %v2425_v59 = vrot.slane %v4482_v7, 1  ;;  %v2473_v33 = vmax.f32 %v2471_v18, %v2472_v27 }
 0x1e7   :  { %v2390_v1 = vrot.slane %v2389_v15, 1  ;;  %v2396_v42 = vmax.f32 %v2394_v23, %v2395_v61  ;;  %v2442_v22 = vrot.slane %v2441_v44, 4  ;;  %v2448_v2 = vmax.f32 %v2185_v37, %v2189_v25 }
 0x1e8   :  { %v2713_v4 = vmax.f32 %v4701_v20, %v2685_v16  ;;  %v2527_v14 = vmax.f32 %v4699_v24, %v2526_v41  ;;  %v2194_v55 = vpop.f32.mrf.mxu0  ;;  %v4703_v17 = vmax.f32 %v4220_v45, %v4702_v30  ;;  %v2479_v19 = vrot.slane %v2478_v11, 2  ;;  %v2779_v24 = vld [vmem:[%s4631_s2 + $0x20] sm:$0xff]  ;;  %v4525_v16 = vpop.f32.mrf.mxu1  ;;  %v4705_v20 = vld [vmem:[#allocation13_spill] sm:$0xff] }
 0x1e9   :  { %v2391_v57 = vmax.f32 %v2389_v15, %v2390_v1  ;;  %v2397_v6 = vrot.slane %v2396_v42, 1  ;;  %v2443_v21 = vmax.f32 %v2441_v44, %v2442_v22  ;;  %v2449_v47 = vrot.slane %v2448_v2, 4  ;;  %3123 = vmatpush3.msra.mxu1 %v2779_v24 }
 0x1ea   :  { %v2714_v62 = vmax.f32 %v4703_v17, %v2686_v39  ;;  %v2533_v38 = vrot.slane %v4704_v63, 4  ;;  %v2193_v23 = vadd.f32 %v2192_v29, %v4410_v46  ;;  %v2196_v43 = vpop.f32.mrf.mxu0  ;;  %v2474_v41 = vrot.slane %v2473_v33, 1  ;;  %3124 = vmatprep.subr.mxu1 %v4692_v54 }
 0x1eb   :  { %v2398_v56 = vmax.f32 %v2396_v42, %v2397_v6  ;;  %v2444_v32 = vrot.slane %v2443_v21, 2  ;;  %v2450_v27 = vmax.f32 %v2448_v2, %v2449_v47  ;;  %v2197_v45 = vadd.f32 %v2196_v43, %v4428_v53  ;;  %v2103_v6 = vpop.f32.mrf.mxu1 }
 0x1ec   :  { %v4516_v18 = vmax.f32 %v2713_v4, %v2714_v62  ;;  %v2528_v37 = vrot.slane %v2527_v14, 2  ;;  %v2195_v40 = vadd.f32 %v2194_v55, %v4419_v31  ;;  %v2198_v46 = vpop.f32.mrf.mxu0  ;;  %v2689_v15 = vmax.f32 %v4468_v5, %v2391_v57  ;;  %v4706_v4 = vld [vmem:[#allocation16_spill] sm:$0xff] }
 0x1ed   :  { %v2445_v61 = vmax.f32 %v2443_v21, %v2444_v32  ;;  %v2451_v44 = vrot.slane %v2450_v27, 2  ;;  %v2497_v53 = vmax.f32 %v2193_v23, %v2197_v45  ;;  %v2199_v25 = vadd.f32 %v2198_v46, %v4441_v49  ;;  %v4709_v32 = vld [vmem:[#allocation7_spill] sm:$0xff]  ;;  %v2105_v24 = vpop.f32.mrf.mxu1 }
 0x1ee   :  { %2745 = vrot.lane.b32.xlu0 %v4516_v18, %s3182_s7  ;;  %v2480_v29 = vmax.f32 %v2478_v11, %v2479_v19  ;;  %v2534_v39 = vmax.f32 %v4704_v63, %v2533_v38  ;;  %v2202_v31 = vpop.f32.mrf.mxu0  ;;  %v2690_v3 = vmax.f32 %v4474_v50, %v2398_v56  ;;  %v4707_v1 = vmax.f32 %v4705_v20, %v4706_v4 }
 0x1ef   :  { %v2446_v22 = vrot.slane %v2445_v61, 1  ;;  %v2452_v5 = vmax.f32 %v2450_v27, %v2451_v44  ;;  %v2498_v2 = vrot.slane %v2497_v53, 4  ;;  %v2504_v55 = vmax.f32 %v2195_v40, %v2199_v25  ;;  %v4711_v25 = vld [vmem:[#allocation17_spill] sm:$0xff] }
 0x1f0   :  { %v2715_v42 = vmax.f32 %v4707_v1, %v2689_v15  ;;  %v2426_v30 = vmax.f32 %v4482_v7, %v2425_v59  ;;  %v4536_v17 = vmax.f32 %v2473_v33, %v2474_v41  ;;  %v2529_v49 = vmax.f32 %v2527_v14, %v2528_v37  ;;  %v2204_v62 = vpop.f32.mrf.mxu0 }
 0x1f1   :  { %v4708_v11 = vmax.f32 %v4258_v48, %v4291_v8  ;;  %v2447_v50 = vmax.f32 %v2445_v61, %v2446_v22  ;;  %v2453_v21 = vrot.slane %v2452_v5, 1  ;;  %v2499_v47 = vmax.f32 %v2497_v53, %v2498_v2  ;;  %v2778_v48 = vld [vmem:[%s4631_s2 + $0x18] sm:$0xff]  ;;  %v4710_v61 = vld [vmem:[#allocation8_spill] sm:$0xff]  ;;  %v2109_v2 = vpop.f32.mrf.mxu1 }
 0x1f2   :  { %v2505_v19 = vrot.slane %v2504_v55, 4  ;;  %v2481_v63 = vrot.slane %v2480_v29, 1  ;;  %v2535_v38 = vrot.slane %v2534_v39, 2  ;;  %v2203_v23 = vadd.f32 %v2202_v31, %v4455_v10  ;;  %v2206_v43 = vpop.f32.mrf.mxu0  ;;  %3125 = vmatpush3.msra.mxu1 %v2778_v48 }
 0x1f3   :  { %v2716_v57 = vmax.f32 %v4708_v11, %v2690_v3  ;;  %v2454_v7 = vmax.f32 %v2452_v5, %v2453_v21  ;;  %v2500_v59 = vrot.slane %v2499_v47, 2  ;;  %v2207_v14 = vadd.f32 %v2206_v43, %v4480_v0  ;;  %3126 = vmatprep.subr.mxu1 %v4692_v54 }
 0x1f4   :  { %v2506_v33 = vmax.f32 %v2504_v55, %v2505_v19  ;;  %v2530_v8 = vrot.slane %v2529_v49, 1  ;;  %v2582_v27 = vrot.slane %v4709_v32, 4  ;;  %v2205_v45 = vadd.f32 %v2204_v62, %v4465_v36  ;;  %v2208_v10 = vpop.f32.mrf.mxu0 }
 0x1f5   :  { %v4542_v56 = vmax.f32 %v2715_v42, %v2716_v57  ;;  %v2693_v41 = vmax.f32 %v4501_v35, %v2447_v50  ;;  %v2501_v37 = vmax.f32 %v2499_v47, %v2500_v59  ;;  %v2553_v0 = vmax.f32 %v2203_v23, %v2207_v14  ;;  %v2111_v14 = vpop.f32.mrf.mxu1 }
 0x1f6   :  { %v2507_v40 = vrot.slane %v2506_v33, 2  ;;  %v2209_v46 = vadd.f32 %v2208_v10, %v4497_v26  ;;  %v2536_v15 = vmax.f32 %v2534_v39, %v2535_v38  ;;  %v2589_v44 = vrot.slane %v4710_v61, 4  ;;  %v2212_v53 = vpop.f32.mrf.mxu0  ;;  %v4713_v39 = vld [vmem:[#allocation18_spill] sm:$0xff] }
 0x1f7   :  { %2747 = vrot.lane.b32.xlu0 %v4542_v56, %s3182_s7  ;;  %v2694_v36 = vmax.f32 %v2426_v30, %v2454_v7  ;;  %v4712_v31 = vmax.f32 %v4267_v9, %v4711_v25  ;;  %v2502_v20 = vrot.slane %v2501_v37, 1  ;;  %v2554_v35 = vrot.slane %v2553_v0, 4  ;;  %v4715_v7 = vld [vmem:[#allocation9_spill] sm:$0xff]  ;;  %v4716_v10 = vld [vmem:[#allocation10_spill] sm:$0xff] }
 0x1f8   :  { %v2508_v4 = vmax.f32 %v2506_v33, %v2507_v40  ;;  %v2560_v1 = vmax.f32 %v2205_v45, %v2209_v46  ;;  %v2482_v42 = vmax.f32 %v2480_v29, %v2481_v63  ;;  %v4559_v22 = vmax.f32 %v2529_v49, %v2530_v8  ;;  %v2214_v5 = vpop.f32.mrf.mxu0 }
 0x1f9   :  { %v2717_v3 = vmax.f32 %v4712_v31, %v2693_v41  ;;  %v2583_v26 = vmax.f32 %v4709_v32, %v2582_v27  ;;  %v4714_v55 = vmax.f32 %v4287_v51, %v4713_v39  ;;  %v2503_v30 = vmax.f32 %v2501_v37, %v2502_v20  ;;  %v2777_v51 = vld [vmem:[%s4631_s2 + $0x10] sm:$0xff] }
 0x1fa   :  { %v2509_v11 = vrot.slane %v2508_v4, 1  ;;  %v2555_v57 = vmax.f32 %v2553_v0, %v2554_v35  ;;  %v2561_v9 = vrot.slane %v2560_v1, 4  ;;  %v2537_v50 = vrot.slane %v2536_v15, 1  ;;  %v2216_v29 = vpop.f32.mrf.mxu0  ;;  %3127 = vmatpush3.msra.mxu1 %v2777_v51 }
 0x1fb   :  { %v2718_v62 = vmax.f32 %v4714_v55, %v2694_v36  ;;  %v2590_v21 = vmax.f32 %v4710_v61, %v2589_v44  ;;  %v2213_v47 = vadd.f32 %v2212_v53, %v4512_v28  ;;  %v2217_v23 = vadd.f32 %v2216_v29, %v2103_v6  ;;  %3128 = vmatprep.subr.mxu1 %v4692_v54 }
 0x1fc   :  { %v2510_v19 = vmax.f32 %v2508_v4, %v2509_v11  ;;  %v2556_v63 = vrot.slane %v2555_v57, 2  ;;  %v2562_v38 = vmax.f32 %v2560_v1, %v2561_v9  ;;  %v2584_v43 = vrot.slane %v2583_v26, 2  ;;  %v2218_v28 = vpop.f32.mrf.mxu0 }
 0x1fd   :  { %v4567_v49 = vmax.f32 %v2717_v3, %v2718_v62  ;;  %v2638_v59 = vrot.slane %v4715_v7, 4  ;;  %v2215_v33 = vadd.f32 %v2214_v5, %v4525_v16  ;;  %v2697_v48 = vmax.f32 %v4536_v17, %v2503_v30  ;;  %v4717_v16 = vld [vmem:[#allocation20_spill] sm:$0xff] }
 0x1fe   :  { %v2557_v8 = vmax.f32 %v2555_v57, %v2556_v63  ;;  %v2563_v32 = vrot.slane %v2562_v38, 2  ;;  %v2609_v6 = vmax.f32 %v2213_v47, %v2217_v23  ;;  %v2219_v27 = vadd.f32 %v2218_v28, %v2105_v24  ;;  %v2222_v37 = vpop.f32.mrf.mxu0  ;;  %v2113_v24 = vpop.f32.mrf.mxu1 }
 0x1ff   :  { %2749 = vrot.lane.b32.xlu1 %v4567_v49, %s3182_s7  ;;  %v2591_v45 = vrot.slane %v2590_v21, 2  ;;  %v2645_v41 = vrot.slane %v4716_v10, 4  ;;  %v2698_v40 = vmax.f32 %v2482_v42, %v2510_v19  ;;  %v4718_v0 = vmax.f32 %v4302_v13, %v4717_v16 }
 0x200   :  { %v2558_v61 = vrot.slane %v2557_v8, 1  ;;  %v2564_v44 = vmax.f32 %v2562_v38, %v2563_v32  ;;  %v2610_v53 = vrot.slane %v2609_v6, 4  ;;  %v2616_v17 = vmax.f32 %v2215_v33, %v2219_v27  ;;  %v2224_v3 = vpop.f32.mrf.mxu0  ;;  %v4723_v27 = vld [vmem:[#allocation24_spill] sm:$0xff] }
 0x201   :  { %v2719_v46 = vmax.f32 %v4718_v0, %v2697_v48  ;;  %v2538_v36 = vmax.f32 %v2536_v15, %v2537_v50  ;;  %v2585_v25 = vmax.f32 %v2583_v26, %v2584_v43  ;;  %v2639_v31 = vmax.f32 %v4715_v7, %v2638_v59  ;;  %v2115_v50 = vpop.f32.mrf.mxu1  ;;  %v4720_v7 = vld [vmem:[#allocation19_spill] sm:$0xff]  ;;  %v4721_v59 = vld [vmem:[#allocation22_spill] sm:$0xff] }
 0x202   :  { %v4719_v20 = vmax.f32 %v4309_v52, %v4346_v58  ;;  %v2559_v35 = vmax.f32 %v2557_v8, %v2558_v61  ;;  %v2565_v1 = vrot.slane %v2564_v44, 1  ;;  %v2611_v42 = vmax.f32 %v2609_v6, %v2610_v53  ;;  %v2226_v62 = vpop.f32.mrf.mxu0  ;;  %v2776_v52 = vld [vmem:[%s4631_s2 + $0x8] sm:$0xff] }
 0x203   :  { %v2617_v5 = vrot.slane %v2616_v17, 4  ;;  %v2592_v13 = vmax.f32 %v2590_v21, %v2591_v45  ;;  %v2646_v39 = vmax.f32 %v4716_v10, %v2645_v41  ;;  %v2223_v55 = vadd.f32 %v2222_v37, %v2109_v2  ;;  %3129 = vmatpush3.msra.mxu1 %v2776_v52 }
 0x204   :  { %v2720_v4 = vmax.f32 %v4719_v20, %v2698_v40  ;;  %v2566_v15 = vmax.f32 %v2564_v44, %v2565_v1  ;;  %v2612_v26 = vrot.slane %v2611_v42, 2  ;;  %v2227_v57 = vadd.f32 %v2226_v62, %v2113_v24  ;;  %v2228_v21 = vpop.f32.mrf.mxu0  ;;  %3130 = vmatprep.subr.mxu1 %v4692_v54  ;;  %v2775_v44 = vld [vmem:[%s4631_s2] sm:$0xff]  ;;  %v4725_v20 = vld [vmem:[#allocation21_spill] sm:$0xff] }
 0x205   :  { %v2618_v11 = vmax.f32 %v2616_v17, %v2617_v5  ;;  %v2586_v58 = vrot.slane %v2585_v25, 1  ;;  %v2640_v9 = vrot.slane %v2639_v31, 2  ;;  %v2225_v47 = vadd.f32 %v2224_v3, %v2111_v14  ;;  %3131 = vmatpush3.msra.mxu1 %v2775_v44 }
 0x206   :  { %v4587_v30 = vmax.f32 %v2719_v46, %v2720_v4  ;;  %v2701_v2 = vmax.f32 %v4559_v22, %v2559_v35  ;;  %v2613_v29 = vmax.f32 %v2611_v42, %v2612_v26  ;;  %v2665_v63 = vmax.f32 %v2223_v55, %v2227_v57  ;;  %v4726_v4 = vld [vmem:[#allocation26_spill] sm:$0xff]  ;;  %v4729_v55 = vld [vmem:[#allocation27_spill] sm:$0xff] }
 0x207   :  { %v2619_v19 = vrot.slane %v2618_v11, 2  ;;  %v2229_v38 = vadd.f32 %v2228_v21, %v2115_v50  ;;  %v2593_v23 = vrot.slane %v2592_v13, 1  ;;  %v2647_v51 = vrot.slane %v2646_v39, 2  ;;  %v4731_v21 = vld [vmem:[#allocation28_spill] sm:$0xff] }
 0x208   :  { %2751 = vrot.lane.b32.xlu0 %v4587_v30, %s3182_s7  ;;  %v2702_v43 = vmax.f32 %v2538_v36, %v2566_v15  ;;  %v4722_v33 = vmax.f32 %v4720_v7, %v4721_v59  ;;  %v2614_v28 = vrot.slane %v2613_v29, 1  ;;  %v2666_v8 = vrot.slane %v2665_v63, 4 }
 0x209   :  { %v2620_v48 = vmax.f32 %v2618_v11, %v2619_v19  ;;  %v2672_v32 = vmax.f32 %v2225_v47, %v2229_v38  ;;  %v2587_v6 = vmax.f32 %v2585_v25, %v2586_v58  ;;  %v2641_v22 = vmax.f32 %v2639_v31, %v2640_v9  ;;  %v4733_v19 = vld [vmem:[#allocation25_spill] sm:$0xff] }
 0x20a   :  { %v2721_v14 = vmax.f32 %v4722_v33, %v2701_v2  ;;  %v4724_v45 = vmax.f32 %v4343_v34, %v4723_v27  ;;  %v2615_v41 = vmax.f32 %v2613_v29, %v2614_v28  ;;  %v2667_v40 = vmax.f32 %v2665_v63, %v2666_v8  ;;  %v4734_v63 = vld [vmem:[#allocation29_spill] sm:$0xff] }
 0x20b   :  { %v2621_v37 = vrot.slane %v2620_v48, 1  ;;  %v2673_v16 = vrot.slane %v2672_v32, 4  ;;  %v2594_v0 = vmax.f32 %v2592_v13, %v2593_v23  ;;  %v2648_v46 = vmax.f32 %v2646_v39, %v2647_v51  ;;  %v4728_v39 = vld [vmem:[#allocation23_spill] sm:$0xff] }
 0x20c   :  { %v2722_v10 = vmax.f32 %v4724_v45, %v2702_v43  ;;  %v2668_v17 = vrot.slane %v2667_v40, 2  ;;  %v2705_v25 = vmax.f32 %v2587_v6, %v2615_v41  ;;  %v2642_v31 = vrot.slane %v2641_v22, 1 }
 0x20d   :  { %v2622_v53 = vmax.f32 %v2620_v48, %v2621_v37  ;;  %v2674_v36 = vmax.f32 %v2672_v32, %v2673_v16  ;;  %v4727_v35 = vmax.f32 %v4725_v20, %v4726_v4  ;;  %v2649_v42 = vrot.slane %v2648_v46, 1 }
 0x20e   :  { %v2732_v61 = vmax.f32 %v2721_v14, %v2722_v10  ;;  %v2669_v34 = vmax.f32 %v2667_v40, %v2668_v17  ;;  %v4730_v62 = vmax.f32 %v4728_v39, %v4729_v55  ;;  %v2643_v26 = vmax.f32 %v2641_v22, %v2642_v31 }
 0x20f   :  { %v2675_v24 = vrot.slane %v2674_v36, 2  ;;  %v2706_v3 = vmax.f32 %v2594_v0, %v2622_v53  ;;  %v2723_v1 = vmax.f32 %v4727_v35, %v2705_v25  ;;  %v2650_v58 = vmax.f32 %v2648_v46, %v2649_v42 }
 0x210   :  { %2753 = vrot.lane.b32.xlu1 %v2732_v61, %s3182_s7  ;;  %v2670_v5 = vrot.slane %v2669_v34, 1  ;;  %v4732_v2 = vmax.f32 %v4386_v12, %v4731_v21  ;;  %v4735_v38 = vmax.f32 %v4733_v19, %v4734_v63 }
 0x211   :  { %v2676_v13 = vmax.f32 %v2674_v36, %v2675_v24  ;;  %v2724_v15 = vmax.f32 %v4730_v62, %v2706_v3 }
 0x212   :  { %v2671_v11 = vmax.f32 %v2669_v34, %v2670_v5 }
 0x213   :  { %v2677_v57 = vrot.slane %v2676_v13, 1  ;;  %v2733_v52 = vmax.f32 %v2723_v1, %v2724_v15 }
 0x214   :  { %v2709_v50 = vmax.f32 %v2643_v26, %v2671_v11 }
 0x215   :  { %v2678_v9 = vmax.f32 %v2676_v13, %v2677_v57  ;;  %2755 = vrot.lane.b32.xlu0 %v2733_v52, %s3182_s7 }
 0x216   :  { %v2725_v29 = vmax.f32 %v4732_v2, %v2709_v50 }
 0x217   :  { %v2710_v47 = vmax.f32 %v2650_v58, %v2678_v9 }
 0x219   :  { %v2726_v23 = vmax.f32 %v4735_v38, %v2710_v47 }
 0x21b   :  { %v2734_v51 = vmax.f32 %v2725_v29, %v2726_v23 }
 0x21d   :  { %2757 = vrot.lane.b32.xlu1 %v2734_v51, %s3182_s7 }
 0x258   :  { %v2744_v7 = vpop.permute.xlu1 %2743 }
 0x259   :  { %v2767_v10 = vmax.f32 %v4486_v60, %v2744_v7 }
 0x260   :  { %v2746_v43 = vpop.permute.xlu0 %2745 }
 0x261   :  { %v2768_v28 = vmax.f32 %v4516_v18, %v2746_v43 }
 0x263   :  { %v2791_v6 = vrot.slane %v2768_v28, 7 }
 0x265   :  { %v2793_v18 = vsel %vm2792_vm1, %v2791_v6, %v2767_v10 }
 0x269   :  { %v2748_v59 = vpop.permute.xlu0 %2747 }
 0x26a   :  { %v2769_v54 = vmax.f32 %v4542_v56, %v2748_v59 }
 0x26c   :  { %v2794_v27 = vrot.slane %v2769_v54, 6 }
 0x26e   :  { %v2796_v40 = vsel %vm2795_vm2, %v2794_v27, %v2793_v18 }
 0x271   :  { %v2750_v33 = vpop.permute.xlu1 %2749 }
 0x272   :  { %v2770_v12 = vmax.f32 %v4567_v49, %v2750_v33 }
 0x274   :  { %v2797_v41 = vrot.slane %v2770_v12, 5 }
 0x276   :  { %v2799_v0 = vsel %vm2798_vm3, %v2797_v41, %v2796_v40 }
 0x27a   :  { %v2752_v14 = vpop.permute.xlu0 %2751 }
 0x27b   :  { %v2771_v32 = vmax.f32 %v4587_v30, %v2752_v14 }
 0x27d   :  { %v2800_v37 = vrot.slane %v2771_v32, 4 }
 0x27f   :  { %v2802_v46 = vsel %vm2801_vm4, %v2800_v37, %v2799_v0 }
 0x282   :  { %v2754_v48 = vpop.permute.xlu1 %2753 }
 0x283   :  { %v2772_v22 = vmax.f32 %v2732_v61, %v2754_v48 }
 0x285   :  { %v2803_v56 = vrot.slane %v2772_v22, 3 }
 0x287   :  { %v2756_v8 = vpop.permute.xlu0 %2755  ;;  %v2805_v61 = vsel %vm2804_vm5, %v2803_v56, %v2802_v46 }
 0x288   :  { %v2773_v45 = vmax.f32 %v2733_v52, %v2756_v8 }
 0x28a   :  { %v2806_v49 = vrot.slane %v2773_v45, 2 }
 0x28c   :  { %v2808_v60 = vsel %vm2807_vm6, %v2806_v49, %v2805_v61 }
 0x28f   :  { %v2758_v16 = vpop.permute.xlu1 %2757 }
 0x290   :  { %v2774_v30 = vmax.f32 %v2734_v51, %v2758_v16 }
 0x292   :  { %v2809_v44 = vrot.slane %v2774_v30, 1 }
 0x294   :  { %v2811_v53 = vsel %vm2810_vm7, %v2809_v44, %v2808_v60 }
 0x295   :  { %3133 = vmatmul.mubr.msk.f32.vlgmr.msra.gmra.mxu1 %vm2812_vm8, %v2811_v53 }
 0x355   :  { %v2881_v17 = vpop.f32.mrf.mxu1 }
 0x356   :  { %2885 = vst [vmem:[%s4632_s3] sm:$0xff] %v2881_v17 }
 0x357   :  { %v3134_v36 = vpop.f32.mrf.mxu1 }

</bundles_post_ra>
